<compile_context>
chip_gen: v7x
topology: tpu7x:2x2x1
jax: 0.10.0
libtpu: 0.0.40
codegen_flags: <defaults>
</compile_context>

<pallas_src>
from functools import partial

import jax
import jax.numpy as jnp
from jax.experimental import pallas as pl
from jax.experimental.pallas import tpu as pltpu


# ---------------------------------------------------------------------------
# Kernel
# ---------------------------------------------------------------------------
def _pg_kernel(num_layers, halo_pad, t_tile, seq_len,
               x_ref, w_in_ref, b_in_ref, w_slab_ref, b_fused_ref,
               w_out_ref, b_out_ref, o_ref, fpad_ref):
    """Grid = (batch, T-tile).  (channels, time) layout, time on lanes.

    x_ref      : (1, dim, t_tile)        compute dtype
    w_in_ref   : (F, dim)                compute dtype
    b_in_ref   : (F, 1)                  f32
    w_slab_ref : (L, 5, F, F)  fused     compute dtype
    b_fused_ref: (L, F, 1)     fused     f32
    w_out_ref  : (C, F)                  compute dtype
    b_out_ref  : (C, 1)                  f32
    o_ref      : (1, C, T)               f32
    fpad_ref   : (F, T + 2*halo_pad)     compute dtype  (halo-padded shift buf)
    """
    F = w_in_ref.shape[0]
    Dp = halo_pad
    T = seq_len
    cdt = w_in_ref.dtype

    t = pl.program_id(1)
    n_t = pl.num_programs(1)

    # ---- stage 1: input 1x1 conv on this (dim, t_tile) slab ---------------
    xt = x_ref[0]                                               # (dim, t_tile)
    ft = jnp.dot(w_in_ref[...], xt, preferred_element_type=jnp.float32)
    ft = (ft + b_in_ref[...]).astype(cdt)                       # (F, t_tile)
    if t_tile == T:
        fpad_ref[:, Dp:Dp + T] = ft                             # static, aligned
    else:
        start = pl.multiple_of(Dp + t * t_tile, 128)            # lane-aligned
        fpad_ref[:, pl.ds(start, t_tile)] = ft

    # ---- stage 2: dilated layer stack + output conv, once per batch -------
    @pl.when(t == n_t - 1)
    def _layers():
        # Zero only the halo bands; the centre is fully rewritten every layer.
        fpad_ref[:, :Dp] = jnp.zeros((F, Dp), cdt)
        fpad_ref[:, Dp + T:] = jnp.zeros((F, Dp), cdt)

        # f carried in f32 across layers; fpad holds the compute-dtype copy
        # used for the shifted MXU reads ('same' zero padding via the halo).
        f = fpad_ref[:, Dp:Dp + T].astype(jnp.float32)          # (F, T)

        # TODO(synk): for very deep stacks (L>=8) switch to lax.fori_loop with
        # pl.ds starts to bound live ranges; static unroll is fine at small L.
        for i in range(num_layers):
            d1 = 1 << (num_layers - 1 - i)
            d2 = 1 << i
            if i > 0:
                fpad_ref[:, Dp:Dp + T] = f.astype(cdt)
            f_in = f
            # Fused (dilated_1 ++ dilated_2 ++ 1x1 fusion) conv as 5
            # accumulating dots on shifted views of the halo buffer.
            z = jnp.dot(w_slab_ref[i, 0], fpad_ref[:, Dp - d1:Dp - d1 + T],
                        preferred_element_type=jnp.float32)
            z += jnp.dot(w_slab_ref[i, 1], fpad_ref[:, Dp + d1:Dp + d1 + T],
                         preferred_element_type=jnp.float32)
            z += jnp.dot(w_slab_ref[i, 2], fpad_ref[:, Dp - d2:Dp - d2 + T],
                         preferred_element_type=jnp.float32)
            z += jnp.dot(w_slab_ref[i, 3], fpad_ref[:, Dp + d2:Dp + d2 + T],
                         preferred_element_type=jnp.float32)
            z += jnp.dot(w_slab_ref[i, 4], fpad_ref[:, Dp:Dp + T],
                         preferred_element_type=jnp.float32)
            z = z + b_fused_ref[i]
            f = jnp.maximum(z, 0.0) + f_in
            # TODO(synk): nn.Dropout is identity in eval mode; training-mode
            # stochastic dropout (p=0.5) is not implemented here.

        out = jnp.dot(w_out_ref[...], f.astype(cdt),
                      preferred_element_type=jnp.float32)
        o_ref[0] = (out + b_out_ref[...]).astype(o_ref.dtype)


# ---------------------------------------------------------------------------
# Wrapper: offline weight fusion + pallas_call
# ---------------------------------------------------------------------------
def _fuse_params(params, compute_dtype):
    """Fold (dilated convs + channel concat + 1x1 fusion conv) into five
    (F, F) slabs per layer plus one bias.  Exact in eval mode (no nonlinearity
    between the dilated convs and the fusion conv)."""
    F = params["w_in"].shape[1]
    wd1, wd2 = params["wd1"], params["wd2"]                  # (L, 3, F, F)
    wfu_top = params["wfu"][:, :F, :]                        # (L, F, F)
    wfu_bot = params["wfu"][:, F:, :]                        # (L, F, F)

    mm = lambda a, b: jnp.einsum("lij,ljk->lik", a, b)
    A0 = mm(wd1[:, 0], wfu_top)          # acts on f(t - d1)
    A2 = mm(wd1[:, 2], wfu_top)          # acts on f(t + d1)
    B0 = mm(wd2[:, 0], wfu_bot)          # acts on f(t - d2)
    B2 = mm(wd2[:, 2], wfu_bot)          # acts on f(t + d2)
    M = mm(wd1[:, 1], wfu_top) + mm(wd2[:, 1], wfu_bot)      # acts on f(t)

    # Slabs in (F_out, F_in) layout for the (F, T) compute layout.
    w_slab = jnp.stack([A0, A2, B0, B2, M], axis=1)          # (L, 5, Fin, Fout)
    w_slab = jnp.transpose(w_slab, (0, 1, 3, 2)).astype(compute_dtype)

    b_fused = (jnp.einsum("lif,lfk->lik", params["bd1"], wfu_top)
               + jnp.einsum("lif,lfk->lik", params["bd2"], wfu_bot)
               + params["bfu"])                                        # (L, 1, F)
    b_fused_t = jnp.transpose(b_fused, (0, 2, 1)).astype(jnp.float32)  # (L, F, 1)

    return {
        "w_in_t": params["w_in"].T.astype(compute_dtype),    # (F, dim)
        "b_in_t": params["b_in"].T.astype(jnp.float32),      # (F, 1)
        "w_slab": w_slab,                                    # (L, 5, F, F)
        "b_fused_t": b_fused_t,                              # (L, F, 1)
        "w_out_t": params["w_out"].T.astype(compute_dtype),  # (C, F)
        "b_out_t": params["b_out"].T.astype(jnp.float32),    # (C, 1)
    }


def _pick_t_tile(T, max_tile=2048):
    """Largest lane-multiple tile that divides T (capped), else the full T."""
    if T % 128 != 0:
        # TODO(synk): for large ragged T, fold batch into lanes or pad x; at
        # non-lane-multiple T we fall back to a single full-T tile.
        return T
    tile = min(max_tile, T)
    tile -= tile % 128
    while T % tile:
        tile -= 128
    return tile


def prediction_generation_pallas(x, params, num_layers,
                                 compute_dtype=jnp.bfloat16, t_tile=None):
    """x: (B, dim, T) float32 (PyTorch Conv1d layout). Returns (B, C, T) f32."""
    B, dim, T = x.shape
    F = params["w_in"].shape[1]
    C = params["w_out"].shape[1]
    L = num_layers
    D = 1 << (L - 1)                       # max dilation
    Dp = ((D + 127) // 128) * 128          # halo rounded up to a lane multiple

    if t_tile is None:
        t_tile = _pick_t_tile(T)
    assert T % t_tile == 0 and (t_tile == T or t_tile % 128 == 0), (T, t_tile)
    n_t = T // t_tile

    fp = _fuse_params(params, compute_dtype)
    x_c = x.astype(compute_dtype)

    def const(shape):
        # whole-array block, constant across the grid (not re-DMA'd per step)
        return pl.BlockSpec(shape, lambda b, t: (0,) * len(shape))

    out = pl.pallas_call(
        partial(_pg_kernel, L, Dp, t_tile, T),
        out_shape=jax.ShapeDtypeStruct((B, C, T), jnp.float32),
        grid=(B, n_t),
        in_specs=[
            pl.BlockSpec((1, dim, t_tile), lambda b, t: (b, 0, t)),   # x tile
            const((F, dim)), const((F, 1)),                           # conv_1x1_in
            const((L, 5, F, F)), const((L, F, 1)),                    # fused layers
            const((C, F)), const((C, 1)),                             # conv_out
        ],
        out_specs=pl.BlockSpec((1, C, T), lambda b, t: (b, 0, 0)),
        scratch_shapes=[pltpu.VMEM((F, T + 2 * Dp), compute_dtype)],
        compiler_params=pltpu.CompilerParams(
            dimension_semantics=("parallel", "arbitrary"),
            vmem_limit_bytes=64 * 1024 * 1024),
    )(x_c, fp["w_in_t"], fp["b_in_t"], fp["w_slab"], fp["b_fused_t"],
      fp["w_out_t"], fp["b_out_t"])
    return out


# ---------------------------------------------------------------------------
# Pure-JAX reference (unfused, original formulation) for correctness checking
# ---------------------------------------------------------------------------
def _dilated_conv_ref(f, w3, b, d):
    T, F = f.shape
    zeros = jnp.zeros((d, F), f.dtype)
    f_m = jnp.concatenate([zeros, f[: T - d]], axis=0)   # f[t - d]
    f_p = jnp.concatenate([f[d:], zeros], axis=0)        # f[t + d]
    return f_m @ w3[0] + f @ w3[1] + f_p @ w3[2] + b


def prediction_generation_ref(x, params, num_layers):
    xt = jnp.transpose(x, (0, 2, 1))                     # (B, T, dim)

    def per_batch(xb):
        f = xb @ params["w_in"] + params["b_in"]
        for i in range(num_layers):
            d1 = 2 ** (num_layers - 1 - i)
            d2 = 2 ** i
            f_in = f
            y1 = _dilated_conv_ref(f, params["wd1"][i], params["bd1"][i], d1)
            y2 = _dilated_conv_ref(f, params["wd2"][i], params["bd2"][i], d2)
            f = jnp.concatenate([y1, y2], -1) @ params["wfu"][i] + params["bfu"][i]
            f = jnp.maximum(f, 0.0)
            f = f + f_in
        return f @ params["w_out"] + params["b_out"]

    return jnp.transpose(jax.vmap(per_batch)(xt), (0, 2, 1))


def init_params(key, num_layers, num_f_maps, dim, num_classes):
    L, F = num_layers, num_f_maps
    ks = jax.random.split(key, 11)
    n = lambda k, shape, scale: (scale * jax.random.normal(k, shape)).astype(jnp.float32)
    return {
        "w_in":  n(ks[0], (dim, F), 0.1),
        "b_in":  n(ks[1], (1, F), 0.01),
        "wd1":   n(ks[2], (L, 3, F, F), 0.1),
        "bd1":   n(ks[3], (L, 1, F), 0.01),
        "wd2":   n(ks[4], (L, 3, F, F), 0.1),
        "bd2":   n(ks[5], (L, 1, F), 0.01),
        "wfu":   n(ks[6], (L, 2 * F, F), 0.1),
        "bfu":   n(ks[7], (L, 1, F), 0.01),
        "w_out": n(ks[8], (F, num_classes), 0.1),
        "b_out": n(ks[9], (1, num_classes), 0.01),
    }


if __name__ == "__main__":
    # Small shapes consistent with the module: x is (batch, dim, T).
    B, num_layers, num_f_maps, dim, num_classes, T = 2, 3, 32, 64, 8, 64

    key = jax.random.PRNGKey(0)
    kx, kp, kx2 = jax.random.split(key, 3)
    x = jax.random.normal(kx, (B, dim, T), dtype=jnp.float32)
    params = init_params(kp, num_layers, num_f_maps, dim, num_classes)
    ref = jax.block_until_ready(prediction_generation_ref(x, params, num_layers))

    # f32 path, single T tile.
    out = jax.block_until_ready(prediction_generation_pallas(
        x, params, num_layers, compute_dtype=jnp.float32))
    assert out.shape == (B, num_classes, T), out.shape
    err = float(jnp.max(jnp.abs(out - ref)))
    assert jnp.allclose(out, ref, atol=1e-3, rtol=1e-3), err

    # bf16 default path (bf16 MXU inputs / shift buffer, f32 accumulation).
    out_bf16 = jax.block_until_ready(
        prediction_generation_pallas(x, params, num_layers))
    assert out_bf16.shape == (B, num_classes, T)
    err_bf16 = float(jnp.max(jnp.abs(out_bf16 - ref)))
    assert err_bf16 < 0.5, err_bf16

    # Multi-T-tile pipelined path (lane-multiple T, two tiles per batch).
    T2 = 256
    x2 = jax.random.normal(kx2, (B, dim, T2), dtype=jnp.float32)
    ref2 = jax.block_until_ready(prediction_generation_ref(x2, params, num_layers))
    out2 = jax.block_until_ready(prediction_generation_pallas(
        x2, params, num_layers, compute_dtype=jnp.float32, t_tile=128))
    err2 = float(jnp.max(jnp.abs(out2 - ref2)))
    assert jnp.allclose(out2, ref2, atol=1e-3, rtol=1e-3), err2

    print("KERNEL_OK")
</pallas_src>

<mosaic_0001>
module attributes {stable_mosaic.version = 11 : i64} {
  func.func @_pg_kernel(%arg0: i32, %arg1: i32, %arg2: memref<1x64x64xf32, #tpu.memory_space<vmem>>, %arg3: memref<32x64xf32, #tpu.memory_space<vmem>>, %arg4: memref<32x1xf32, #tpu.memory_space<vmem>>, %arg5: memref<3x5x32x32xf32, #tpu.memory_space<vmem>>, %arg6: memref<3x32x1xf32, #tpu.memory_space<vmem>>, %arg7: memref<8x32xf32, #tpu.memory_space<vmem>>, %arg8: memref<8x1xf32, #tpu.memory_space<vmem>>, %arg9: memref<1x8x64xf32, #tpu.memory_space<vmem>>, %arg10: memref<32x320xf32, #tpu.memory_space<vmem>>) attributes {dimension_semantics = [#tpu.dimension_semantics<parallel>, #tpu.dimension_semantics<arbitrary>], iteration_bounds = array<i64: 2, 1>, scalar_prefetch = 0 : i64, scratch_operands = 1 : i64, tpu.core_type = #tpu.core_type<tc>, window_params = [{transform_indices = @transform_0, window_bounds = array<i64: 1, 64, 64>}, {pipeline_mode = #tpu.pipeline_mode<synchronous>, transform_indices = @transform_1, window_bounds = array<i64: 32, 64>}, {pipeline_mode = #tpu.pipeline_mode<synchronous>, transform_indices = @transform_2, window_bounds = array<i64: 32, 1>}, {pipeline_mode = #tpu.pipeline_mode<synchronous>, transform_indices = @transform_3, window_bounds = array<i64: 3, 5, 32, 32>}, {pipeline_mode = #tpu.pipeline_mode<synchronous>, transform_indices = @transform_4, window_bounds = array<i64: 3, 32, 1>}, {pipeline_mode = #tpu.pipeline_mode<synchronous>, transform_indices = @transform_5, window_bounds = array<i64: 8, 32>}, {pipeline_mode = #tpu.pipeline_mode<synchronous>, transform_indices = @transform_6, window_bounds = array<i64: 8, 1>}, {transform_indices = @transform_7, window_bounds = array<i64: 1, 8, 64>}]} {
    %c0 = arith.constant 0 : index
    %c0_0 = arith.constant 0 : index
    %c0_1 = arith.constant 0 : index
    %0 = vector.load %arg2[%c0, %c0_0, %c0_1] : memref<1x64x64xf32, #tpu.memory_space<vmem>>, vector<1x64x64xf32>
    %1 = vector.shape_cast %0 : vector<1x64x64xf32> to vector<64x64xf32>
    %c0_2 = arith.constant 0 : index
    %c0_3 = arith.constant 0 : index
    %2 = vector.load %arg3[%c0_2, %c0_3] : memref<32x64xf32, #tpu.memory_space<vmem>>, vector<32x64xf32>
    %cst = arith.constant dense<0.000000e+00> : vector<32x64xf32>
    %3 = tpu.matmul %2, %1, %cst {dimension_numbers = #tpu.dot_dimension_numbers<[1], [0], [0], [1], [0, 0, 1, 1], [], []>} : vector<32x64xf32>, vector<64x64xf32>, vector<32x64xf32> -> vector<32x64xf32>
    %c0_4 = arith.constant 0 : index
    %c0_5 = arith.constant 0 : index
    %4 = vector.load %arg4[%c0_4, %c0_5] : memref<32x1xf32, #tpu.memory_space<vmem>>, vector<32x1xf32>
    %5 = vector.broadcast %4 : vector<32x1xf32> to vector<32x64xf32>
    %6 = arith.addf %3, %5 : vector<32x64xf32>
    %c0_6 = arith.constant 0 : index
    %c128 = arith.constant 128 : index
    %7 = vector.load %arg10[%c0_6, %c128] : memref<32x320xf32, #tpu.memory_space<vmem>>, vector<32x64xf32>
    tpu.vector_store %arg10[%c0_6, %c128], %6 {strides = array<i32>} : memref<32x320xf32, #tpu.memory_space<vmem>>, vector<32x64xf32>,
    %c0_i32 = arith.constant 0 : i32
    %8 = arith.cmpi eq, %arg1, %c0_i32 : i32
    %9 = arith.extui %8 : i1 to i32
    %c0_i32_7 = arith.constant 0 : i32
    %10 = arith.cmpi ne, %9, %c0_i32_7 : i32
    scf.if %10 {
      %cst_8 = arith.constant 0.000000e+00 : f32
      %11 = vector.broadcast %cst_8 : f32 to vector<32x128xf32>
      %c0_9 = arith.constant 0 : index
      %c0_10 = arith.constant 0 : index
      %12 = vector.load %arg10[%c0_9, %c0_10] : memref<32x320xf32, #tpu.memory_space<vmem>>, vector<32x128xf32>
      tpu.vector_store %arg10[%c0_9, %c0_10], %11 {strides = array<i32>} : memref<32x320xf32, #tpu.memory_space<vmem>>, vector<32x128xf32>,
      %cst_11 = arith.constant 0.000000e+00 : f32
      %13 = vector.broadcast %cst_11 : f32 to vector<32x128xf32>
      %c0_12 = arith.constant 0 : index
      %c192 = arith.constant 192 : index
      %14 = vector.load %arg10[%c0_12, %c192] : memref<32x320xf32, #tpu.memory_space<vmem>>, vector<32x128xf32>
      tpu.vector_store %arg10[%c0_12, %c192], %13 {strides = array<i32>} : memref<32x320xf32, #tpu.memory_space<vmem>>, vector<32x128xf32>,
      %c0_13 = arith.constant 0 : index
      %c128_14 = arith.constant 128 : index
      %15 = vector.load %arg10[%c0_13, %c128_14] : memref<32x320xf32, #tpu.memory_space<vmem>>, vector<32x64xf32>
      %c0_15 = arith.constant 0 : index
      %c0_16 = arith.constant 0 : index
      %c0_17 = arith.constant 0 : index
      %c0_18 = arith.constant 0 : index
      %16 = vector.load %arg5[%c0_15, %c0_16, %c0_17, %c0_18] : memref<3x5x32x32xf32, #tpu.memory_space<vmem>>, vector<1x1x32x32xf32>
      %17 = vector.shape_cast %16 : vector<1x1x32x32xf32> to vector<32x32xf32>
      %c0_19 = arith.constant 0 : index
      %c124 = arith.constant 124 : index
      %18 = vector.load %arg10[%c0_19, %c124] : memref<32x320xf32, #tpu.memory_space<vmem>>, vector<32x64xf32>
      %cst_20 = arith.constant dense<0.000000e+00> : vector<32x64xf32>
      %19 = tpu.matmul %17, %18, %cst_20 {dimension_numbers = #tpu.dot_dimension_numbers<[1], [0], [0], [1], [0, 0, 1, 1], [], []>} : vector<32x32xf32>, vector<32x64xf32>, vector<32x64xf32> -> vector<32x64xf32>
      %c0_21 = arith.constant 0 : index
      %c1 = arith.constant 1 : index
      %c0_22 = arith.constant 0 : index
      %c0_23 = arith.constant 0 : index
      %20 = vector.load %arg5[%c0_21, %c1, %c0_22, %c0_23] : memref<3x5x32x32xf32, #tpu.memory_space<vmem>>, vector<1x1x32x32xf32>
      %21 = vector.shape_cast %20 : vector<1x1x32x32xf32> to vector<32x32xf32>
      %c0_24 = arith.constant 0 : index
      %c132 = arith.constant 132 : index
      %22 = vector.load %arg10[%c0_24, %c132] : memref<32x320xf32, #tpu.memory_space<vmem>>, vector<32x64xf32>
      %cst_25 = arith.constant dense<0.000000e+00> : vector<32x64xf32>
      %23 = tpu.matmul %21, %22, %cst_25 {dimension_numbers = #tpu.dot_dimension_numbers<[1], [0], [0], [1], [0, 0, 1, 1], [], []>} : vector<32x32xf32>, vector<32x64xf32>, vector<32x64xf32> -> vector<32x64xf32>
      %24 = arith.addf %19, %23 : vector<32x64xf32>
      %c0_26 = arith.constant 0 : index
      %c2 = arith.constant 2 : index
      %c0_27 = arith.constant 0 : index
      %c0_28 = arith.constant 0 : index
      %25 = vector.load %arg5[%c0_26, %c2, %c0_27, %c0_28] : memref<3x5x32x32xf32, #tpu.memory_space<vmem>>, vector<1x1x32x32xf32>
      %26 = vector.shape_cast %25 : vector<1x1x32x32xf32> to vector<32x32xf32>
      %c0_29 = arith.constant 0 : index
      %c127 = arith.constant 127 : index
      %27 = vector.load %arg10[%c0_29, %c127] : memref<32x320xf32, #tpu.memory_space<vmem>>, vector<32x64xf32>
      %cst_30 = arith.constant dense<0.000000e+00> : vector<32x64xf32>
      %28 = tpu.matmul %26, %27, %cst_30 {dimension_numbers = #tpu.dot_dimension_numbers<[1], [0], [0], [1], [0, 0, 1, 1], [], []>} : vector<32x32xf32>, vector<32x64xf32>, vector<32x64xf32> -> vector<32x64xf32>
      %29 = arith.addf %24, %28 : vector<32x64xf32>
      %c0_31 = arith.constant 0 : index
      %c3 = arith.constant 3 : index
      %c0_32 = arith.constant 0 : index
      %c0_33 = arith.constant 0 : index
      %30 = vector.load %arg5[%c0_31, %c3, %c0_32, %c0_33] : memref<3x5x32x32xf32, #tpu.memory_space<vmem>>, vector<1x1x32x32xf32>
      %31 = vector.shape_cast %30 : vector<1x1x32x32xf32> to vector<32x32xf32>
      %c0_34 = arith.constant 0 : index
      %c129 = arith.constant 129 : index
      %32 = vector.load %arg10[%c0_34, %c129] : memref<32x320xf32, #tpu.memory_space<vmem>>, vector<32x64xf32>
      %cst_35 = arith.constant dense<0.000000e+00> : vector<32x64xf32>
      %33 = tpu.matmul %31, %32, %cst_35 {dimension_numbers = #tpu.dot_dimension_numbers<[1], [0], [0], [1], [0, 0, 1, 1], [], []>} : vector<32x32xf32>, vector<32x64xf32>, vector<32x64xf32> -> vector<32x64xf32>
      %34 = arith.addf %29, %33 : vector<32x64xf32>
      %c0_36 = arith.constant 0 : index
      %c4 = arith.constant 4 : index
      %c0_37 = arith.constant 0 : index
      %c0_38 = arith.constant 0 : index
      %35 = vector.load %arg5[%c0_36, %c4, %c0_37, %c0_38] : memref<3x5x32x32xf32, #tpu.memory_space<vmem>>, vector<1x1x32x32xf32>
      %36 = vector.shape_cast %35 : vector<1x1x32x32xf32> to vector<32x32xf32>
      %c0_39 = arith.constant 0 : index
      %c128_40 = arith.constant 128 : index
      %37 = vector.load %arg10[%c0_39, %c128_40] : memref<32x320xf32, #tpu.memory_space<vmem>>, vector<32x64xf32>
      %cst_41 = arith.constant dense<0.000000e+00> : vector<32x64xf32>
      %38 = tpu.matmul %36, %37, %cst_41 {dimension_numbers = #tpu.dot_dimension_numbers<[1], [0], [0], [1], [0, 0, 1, 1], [], []>} : vector<32x32xf32>, vector<32x64xf32>, vector<32x64xf32> -> vector<32x64xf32>
      %39 = arith.addf %34, %38 : vector<32x64xf32>
      %c0_42 = arith.constant 0 : index
      %c0_43 = arith.constant 0 : index
      %c0_44 = arith.constant 0 : index
      %40 = vector.load %arg6[%c0_42, %c0_43, %c0_44] : memref<3x32x1xf32, #tpu.memory_space<vmem>>, vector<1x32x1xf32>
      %41 = vector.shape_cast %40 : vector<1x32x1xf32> to vector<32x1xf32>
      %42 = vector.broadcast %41 : vector<32x1xf32> to vector<32x64xf32>
      %43 = arith.addf %39, %42 : vector<32x64xf32>
      %cst_45 = arith.constant 0.000000e+00 : f32
      %44 = vector.broadcast %cst_45 : f32 to vector<32x64xf32>
      %45 = arith.maximumf %43, %44 : vector<32x64xf32>
      %46 = arith.addf %45, %15 : vector<32x64xf32>
      %c0_46 = arith.constant 0 : index
      %c128_47 = arith.constant 128 : index
      %47 = vector.load %arg10[%c0_46, %c128_47] : memref<32x320xf32, #tpu.memory_space<vmem>>, vector<32x64xf32>
      tpu.vector_store %arg10[%c0_46, %c128_47], %46 {strides = array<i32>} : memref<32x320xf32, #tpu.memory_space<vmem>>, vector<32x64xf32>,
      %c1_48 = arith.constant 1 : index
      %c0_49 = arith.constant 0 : index
      %c0_50 = arith.constant 0 : index
      %c0_51 = arith.constant 0 : index
      %48 = vector.load %arg5[%c1_48, %c0_49, %c0_50, %c0_51] : memref<3x5x32x32xf32, #tpu.memory_space<vmem>>, vector<1x1x32x32xf32>
      %49 = vector.shape_cast %48 : vector<1x1x32x32xf32> to vector<32x32xf32>
      %c0_52 = arith.constant 0 : index
      %c126 = arith.constant 126 : index
      %50 = vector.load %arg10[%c0_52, %c126] : memref<32x320xf32, #tpu.memory_space<vmem>>, vector<32x64xf32>
      %cst_53 = arith.constant dense<0.000000e+00> : vector<32x64xf32>
      %51 = tpu.matmul %49, %50, %cst_53 {dimension_numbers = #tpu.dot_dimension_numbers<[1], [0], [0], [1], [0, 0, 1, 1], [], []>} : vector<32x32xf32>, vector<32x64xf32>, vector<32x64xf32> -> vector<32x64xf32>
      %c1_54 = arith.constant 1 : index
      %c1_55 = arith.constant 1 : index
      %c0_56 = arith.constant 0 : index
      %c0_57 = arith.constant 0 : index
      %52 = vector.load %arg5[%c1_54, %c1_55, %c0_56, %c0_57] : memref<3x5x32x32xf32, #tpu.memory_space<vmem>>, vector<1x1x32x32xf32>
      %53 = vector.shape_cast %52 : vector<1x1x32x32xf32> to vector<32x32xf32>
      %c0_58 = arith.constant 0 : index
      %c130 = arith.constant 130 : index
      %54 = vector.load %arg10[%c0_58, %c130] : memref<32x320xf32, #tpu.memory_space<vmem>>, vector<32x64xf32>
      %cst_59 = arith.constant dense<0.000000e+00> : vector<32x64xf32>
      %55 = tpu.matmul %53, %54, %cst_59 {dimension_numbers = #tpu.dot_dimension_numbers<[1], [0], [0], [1], [0, 0, 1, 1], [], []>} : vector<32x32xf32>, vector<32x64xf32>, vector<32x64xf32> -> vector<32x64xf32>
      %56 = arith.addf %51, %55 : vector<32x64xf32>
      %c1_60 = arith.constant 1 : index
      %c2_61 = arith.constant 2 : index
      %c0_62 = arith.constant 0 : index
      %c0_63 = arith.constant 0 : index
      %57 = vector.load %arg5[%c1_60, %c2_61, %c0_62, %c0_63] : memref<3x5x32x32xf32, #tpu.memory_space<vmem>>, vector<1x1x32x32xf32>
      %58 = vector.shape_cast %57 : vector<1x1x32x32xf32> to vector<32x32xf32>
      %c0_64 = arith.constant 0 : index
      %c126_65 = arith.constant 126 : index
      %59 = vector.load %arg10[%c0_64, %c126_65] : memref<32x320xf32, #tpu.memory_space<vmem>>, vector<32x64xf32>
      %cst_66 = arith.constant dense<0.000000e+00> : vector<32x64xf32>
      %60 = tpu.matmul %58, %59, %cst_66 {dimension_numbers = #tpu.dot_dimension_numbers<[1], [0], [0], [1], [0, 0, 1, 1], [], []>} : vector<32x32xf32>, vector<32x64xf32>, vector<32x64xf32> -> vector<32x64xf32>
      %61 = arith.addf %56, %60 : vector<32x64xf32>
      %c1_67 = arith.constant 1 : index
      %c3_68 = arith.constant 3 : index
      %c0_69 = arith.constant 0 : index
      %c0_70 = arith.constant 0 : index
      %62 = vector.load %arg5[%c1_67, %c3_68, %c0_69, %c0_70] : memref<3x5x32x32xf32, #tpu.memory_space<vmem>>, vector<1x1x32x32xf32>
      %63 = vector.shape_cast %62 : vector<1x1x32x32xf32> to vector<32x32xf32>
      %c0_71 = arith.constant 0 : index
      %c130_72 = arith.constant 130 : index
      %64 = vector.load %arg10[%c0_71, %c130_72] : memref<32x320xf32, #tpu.memory_space<vmem>>, vector<32x64xf32>
      %cst_73 = arith.constant dense<0.000000e+00> : vector<32x64xf32>
      %65 = tpu.matmul %63, %64, %cst_73 {dimension_numbers = #tpu.dot_dimension_numbers<[1], [0], [0], [1], [0, 0, 1, 1], [], []>} : vector<32x32xf32>, vector<32x64xf32>, vector<32x64xf32> -> vector<32x64xf32>
      %66 = arith.addf %61, %65 : vector<32x64xf32>
      %c1_74 = arith.constant 1 : index
      %c4_75 = arith.constant 4 : index
      %c0_76 = arith.constant 0 : index
      %c0_77 = arith.constant 0 : index
      %67 = vector.load %arg5[%c1_74, %c4_75, %c0_76, %c0_77] : memref<3x5x32x32xf32, #tpu.memory_space<vmem>>, vector<1x1x32x32xf32>
      %68 = vector.shape_cast %67 : vector<1x1x32x32xf32> to vector<32x32xf32>
      %c0_78 = arith.constant 0 : index
      %c128_79 = arith.constant 128 : index
      %69 = vector.load %arg10[%c0_78, %c128_79] : memref<32x320xf32, #tpu.memory_space<vmem>>, vector<32x64xf32>
      %cst_80 = arith.constant dense<0.000000e+00> : vector<32x64xf32>
      %70 = tpu.matmul %68, %69, %cst_80 {dimension_numbers = #tpu.dot_dimension_numbers<[1], [0], [0], [1], [0, 0, 1, 1], [], []>} : vector<32x32xf32>, vector<32x64xf32>, vector<32x64xf32> -> vector<32x64xf32>
      %71 = arith.addf %66, %70 : vector<32x64xf32>
      %c1_81 = arith.constant 1 : index
      %c0_82 = arith.constant 0 : index
      %c0_83 = arith.constant 0 : index
      %72 = vector.load %arg6[%c1_81, %c0_82, %c0_83] : memref<3x32x1xf32, #tpu.memory_space<vmem>>, vector<1x32x1xf32>
      %73 = vector.shape_cast %72 : vector<1x32x1xf32> to vector<32x1xf32>
      %74 = vector.broadcast %73 : vector<32x1xf32> to vector<32x64xf32>
      %75 = arith.addf %71, %74 : vector<32x64xf32>
      %cst_84 = arith.constant 0.000000e+00 : f32
      %76 = vector.broadcast %cst_84 : f32 to vector<32x64xf32>
      %77 = arith.maximumf %75, %76 : vector<32x64xf32>
      %78 = arith.addf %77, %46 : vector<32x64xf32>
      %c0_85 = arith.constant 0 : index
      %c128_86 = arith.constant 128 : index
      %79 = vector.load %arg10[%c0_85, %c128_86] : memref<32x320xf32, #tpu.memory_space<vmem>>, vector<32x64xf32>
      tpu.vector_store %arg10[%c0_85, %c128_86], %78 {strides = array<i32>} : memref<32x320xf32, #tpu.memory_space<vmem>>, vector<32x64xf32>,
      %c2_87 = arith.constant 2 : index
      %c0_88 = arith.constant 0 : index
      %c0_89 = arith.constant 0 : index
      %c0_90 = arith.constant 0 : index
      %80 = vector.load %arg5[%c2_87, %c0_88, %c0_89, %c0_90] : memref<3x5x32x32xf32, #tpu.memory_space<vmem>>, vector<1x1x32x32xf32>
      %81 = vector.shape_cast %80 : vector<1x1x32x32xf32> to vector<32x32xf32>
      %c0_91 = arith.constant 0 : index
      %c127_92 = arith.constant 127 : index
      %82 = vector.load %arg10[%c0_91, %c127_92] : memref<32x320xf32, #tpu.memory_space<vmem>>, vector<32x64xf32>
      %cst_93 = arith.constant dense<0.000000e+00> : vector<32x64xf32>
      %83 = tpu.matmul %81, %82, %cst_93 {dimension_numbers = #tpu.dot_dimension_numbers<[1], [0], [0], [1], [0, 0, 1, 1], [], []>} : vector<32x32xf32>, vector<32x64xf32>, vector<32x64xf32> -> vector<32x64xf32>
      %c2_94 = arith.constant 2 : index
      %c1_95 = arith.constant 1 : index
      %c0_96 = arith.constant 0 : index
      %c0_97 = arith.constant 0 : index
      %84 = vector.load %arg5[%c2_94, %c1_95, %c0_96, %c0_97] : memref<3x5x32x32xf32, #tpu.memory_space<vmem>>, vector<1x1x32x32xf32>
      %85 = vector.shape_cast %84 : vector<1x1x32x32xf32> to vector<32x32xf32>
      %c0_98 = arith.constant 0 : index
      %c129_99 = arith.constant 129 : index
      %86 = vector.load %arg10[%c0_98, %c129_99] : memref<32x320xf32, #tpu.memory_space<vmem>>, vector<32x64xf32>
      %cst_100 = arith.constant dense<0.000000e+00> : vector<32x64xf32>
      %87 = tpu.matmul %85, %86, %cst_100 {dimension_numbers = #tpu.dot_dimension_numbers<[1], [0], [0], [1], [0, 0, 1, 1], [], []>} : vector<32x32xf32>, vector<32x64xf32>, vector<32x64xf32> -> vector<32x64xf32>
      %88 = arith.addf %83, %87 : vector<32x64xf32>
      %c2_101 = arith.constant 2 : index
      %c2_102 = arith.constant 2 : index
      %c0_103 = arith.constant 0 : index
      %c0_104 = arith.constant 0 : index
      %89 = vector.load %arg5[%c2_101, %c2_102, %c0_103, %c0_104] : memref<3x5x32x32xf32, #tpu.memory_space<vmem>>, vector<1x1x32x32xf32>
      %90 = vector.shape_cast %89 : vector<1x1x32x32xf32> to vector<32x32xf32>
      %c0_105 = arith.constant 0 : index
      %c124_106 = arith.constant 124 : index
      %91 = vector.load %arg10[%c0_105, %c124_106] : memref<32x320xf32, #tpu.memory_space<vmem>>, vector<32x64xf32>
      %cst_107 = arith.constant dense<0.000000e+00> : vector<32x64xf32>
      %92 = tpu.matmul %90, %91, %cst_107 {dimension_numbers = #tpu.dot_dimension_numbers<[1], [0], [0], [1], [0, 0, 1, 1], [], []>} : vector<32x32xf32>, vector<32x64xf32>, vector<32x64xf32> -> vector<32x64xf32>
      %93 = arith.addf %88, %92 : vector<32x64xf32>
      %c2_108 = arith.constant 2 : index
      %c3_109 = arith.constant 3 : index
      %c0_110 = arith.constant 0 : index
      %c0_111 = arith.constant 0 : index
      %94 = vector.load %arg5[%c2_108, %c3_109, %c0_110, %c0_111] : memref<3x5x32x32xf32, #tpu.memory_space<vmem>>, vector<1x1x32x32xf32>
      %95 = vector.shape_cast %94 : vector<1x1x32x32xf32> to vector<32x32xf32>
      %c0_112 = arith.constant 0 : index
      %c132_113 = arith.constant 132 : index
      %96 = vector.load %arg10[%c0_112, %c132_113] : memref<32x320xf32, #tpu.memory_space<vmem>>, vector<32x64xf32>
      %cst_114 = arith.constant dense<0.000000e+00> : vector<32x64xf32>
      %97 = tpu.matmul %95, %96, %cst_114 {dimension_numbers = #tpu.dot_dimension_numbers<[1], [0], [0], [1], [0, 0, 1, 1], [], []>} : vector<32x32xf32>, vector<32x64xf32>, vector<32x64xf32> -> vector<32x64xf32>
      %98 = arith.addf %93, %97 : vector<32x64xf32>
      %c2_115 = arith.constant 2 : index
      %c4_116 = arith.constant 4 : index
      %c0_117 = arith.constant 0 : index
      %c0_118 = arith.constant 0 : index
      %99 = vector.load %arg5[%c2_115, %c4_116, %c0_117, %c0_118] : memref<3x5x32x32xf32, #tpu.memory_space<vmem>>, vector<1x1x32x32xf32>
      %100 = vector.shape_cast %99 : vector<1x1x32x32xf32> to vector<32x32xf32>
      %c0_119 = arith.constant 0 : index
      %c128_120 = arith.constant 128 : index
      %101 = vector.load %arg10[%c0_119, %c128_120] : memref<32x320xf32, #tpu.memory_space<vmem>>, vector<32x64xf32>
      %cst_121 = arith.constant dense<0.000000e+00> : vector<32x64xf32>
      %102 = tpu.matmul %100, %101, %cst_121 {dimension_numbers = #tpu.dot_dimension_numbers<[1], [0], [0], [1], [0, 0, 1, 1], [], []>} : vector<32x32xf32>, vector<32x64xf32>, vector<32x64xf32> -> vector<32x64xf32>
      %103 = arith.addf %98, %102 : vector<32x64xf32>
      %c2_122 = arith.constant 2 : index
      %c0_123 = arith.constant 0 : index
      %c0_124 = arith.constant 0 : index
      %104 = vector.load %arg6[%c2_122, %c0_123, %c0_124] : memref<3x32x1xf32, #tpu.memory_space<vmem>>, vector<1x32x1xf32>
      %105 = vector.shape_cast %104 : vector<1x32x1xf32> to vector<32x1xf32>
      %106 = vector.broadcast %105 : vector<32x1xf32> to vector<32x64xf32>
      %107 = arith.addf %103, %106 : vector<32x64xf32>
      %cst_125 = arith.constant 0.000000e+00 : f32
      %108 = vector.broadcast %cst_125 : f32 to vector<32x64xf32>
      %109 = arith.maximumf %107, %108 : vector<32x64xf32>
      %110 = arith.addf %109, %78 : vector<32x64xf32>
      %c0_126 = arith.constant 0 : index
      %c0_127 = arith.constant 0 : index
      %111 = vector.load %arg7[%c0_126, %c0_127] : memref<8x32xf32, #tpu.memory_space<vmem>>, vector<8x32xf32>
      %cst_128 = arith.constant dense<0.000000e+00> : vector<8x64xf32>
      %112 = tpu.matmul %111, %110, %cst_128 {dimension_numbers = #tpu.dot_dimension_numbers<[1], [0], [0], [1], [0, 0, 1, 1], [], []>} : vector<8x32xf32>, vector<32x64xf32>, vector<8x64xf32> -> vector<8x64xf32>
      %c0_129 = arith.constant 0 : index
      %c0_130 = arith.constant 0 : index
      %113 = vector.load %arg8[%c0_129, %c0_130] : memref<8x1xf32, #tpu.memory_space<vmem>>, vector<8x1xf32>
      %114 = vector.broadcast %113 : vector<8x1xf32> to vector<8x64xf32>
      %115 = arith.addf %112, %114 : vector<8x64xf32>
      %c0_131 = arith.constant 0 : index
      %c0_132 = arith.constant 0 : index
      %c0_133 = arith.constant 0 : index
      %116 = vector.load %arg9[%c0_131, %c0_132, %c0_133] : memref<1x8x64xf32, #tpu.memory_space<vmem>>, vector<1x8x64xf32>
      %117 = vector.shape_cast %116 : vector<1x8x64xf32> to vector<8x64xf32>
      %118 = vector.shape_cast %115 : vector<8x64xf32> to vector<1x8x64xf32>
      tpu.vector_store %arg9[%c0_131, %c0_132, %c0_133], %118 {strides = array<i32>} : memref<1x8x64xf32, #tpu.memory_space<vmem>>, vector<1x8x64xf32>,
    } else {
    }
    return
  }
  func.func @transform_0(%arg0: i32, %arg1: i32) -> (i32, i32, i32) {
    %c0_i32 = arith.constant 0 : i32
    %c0_i32_0 = arith.constant 0 : i32
    return %arg0, %c0_i32, %arg1 : i32, i32, i32
  }
  func.func @transform_1(%arg0: i32, %arg1: i32) -> (i32, i32) {
    %c0_i32 = arith.constant 0 : i32
    %c0_i32_0 = arith.constant 0 : i32
    %c0_i32_1 = arith.constant 0 : i32
    return %c0_i32, %c0_i32_0 : i32, i32
  }
  func.func @transform_2(%arg0: i32, %arg1: i32) -> (i32, i32) {
    %c0_i32 = arith.constant 0 : i32
    %c0_i32_0 = arith.constant 0 : i32
    %c0_i32_1 = arith.constant 0 : i32
    return %c0_i32, %c0_i32_0 : i32, i32
  }
  func.func @transform_3(%arg0: i32, %arg1: i32) -> (i32, i32, i32, i32) {
    %c0_i32 = arith.constant 0 : i32
    %c0_i32_0 = arith.constant 0 : i32
    %c0_i32_1 = arith.constant 0 : i32
    %c0_i32_2 = arith.constant 0 : i32
    %c0_i32_3 = arith.constant 0 : i32
    return %c0_i32, %c0_i32_0, %c0_i32_1, %c0_i32_2 : i32, i32, i32, i32
  }
  func.func @transform_4(%arg0: i32, %arg1: i32) -> (i32, i32, i32) {
    %c0_i32 = arith.constant 0 : i32
    %c0_i32_0 = arith.constant 0 : i32
    %c0_i32_1 = arith.constant 0 : i32
    %c0_i32_2 = arith.constant 0 : i32
    return %c0_i32, %c0_i32_0, %c0_i32_1 : i32, i32, i32
  }
  func.func @transform_5(%arg0: i32, %arg1: i32) -> (i32, i32) {
    %c0_i32 = arith.constant 0 : i32
    %c0_i32_0 = arith.constant 0 : i32
    %c0_i32_1 = arith.constant 0 : i32
    return %c0_i32, %c0_i32_0 : i32, i32
  }
  func.func @transform_6(%arg0: i32, %arg1: i32) -> (i32, i32) {
    %c0_i32 = arith.constant 0 : i32
    %c0_i32_0 = arith.constant 0 : i32
    %c0_i32_1 = arith.constant 0 : i32
    return %c0_i32, %c0_i32_0 : i32, i32
  }
  func.func @transform_7(%arg0: i32, %arg1: i32) -> (i32, i32, i32) {
    %c0_i32 = arith.constant 0 : i32
    %c0_i32_0 = arith.constant 0 : i32
    %c0_i32_1 = arith.constant 0 : i32
    return %arg0, %c0_i32, %c0_i32_0 : i32, i32, i32
  }
}

</mosaic_0001>

<bundles_post_ra>
// kernel: tpu_custom_call.1
= control target key start
LH: loop header
LB: loop body
LE: loop exit
PB: predicated region body
PF: predicated region fallthrough
CT: control target
= control target key end

     0   :  { %s4591_s0 = inlined_call_operand.hbm [shape: f32[2,64,64], index: 0, kind: input, shape index: {}]   ;;  %s4592_s1 = inlined_call_operand.hbm [shape: f32[32,64], index: 1, kind: input, shape index: {}]   ;;  %s4593_s2 = inlined_call_operand.hbm [shape: f32[32,1], index: 2, kind: input, shape index: {}]   ;;  %s4594_s3 = inlined_call_operand.hbm [shape: f32[3,5,32,32], index: 3, kind: input, shape index: {}]   ;;  %s4595_s4 = inlined_call_operand.hbm [shape: f32[3,32,1], index: 4, kind: input, shape index: {}]   ;;  %s4596_s5 = inlined_call_operand.hbm [shape: f32[8,32], index: 5, kind: input, shape index: {}]   ;;  %s4597_s6 = inlined_call_operand.hbm [shape: f32[8,1], index: 6, kind: input, shape index: {}]   ;;  %s4598_s7 = inlined_call_operand.hbm [shape: f32[2,8,64], index: 7, kind: output, shape index: {}]  }
   0x1   :  { %4608 = sst [smem:[#allocation21_spill]] %s4592_s1 }
   0x2   :  { %4609 = sst [smem:[#allocation22_spill]] %s4598_s7 }
   0x3   :  { %12 = vsyncpa [#allocation4], 0 }
   0x4   :  { %14 = vsyncpa [#allocation4 + $0x1], 0 }
   0x5   :  { %15 = vsyncpa [#allocation7], 0 }
   0x6   :  { %16 = vsyncpa [#allocation10], 0 }
   0x7   :  { %17 = vsyncpa [#allocation13], 0 }
   0x8   :  { %18 = vsyncpa [#allocation5], 0 }
   0x9   :  { %20 = vsyncpa [#allocation5 + $0x1], 0  ;;  %s4000_s24 = smov 0   ;;  %s4002_s25 = smov 0  }
   0xa   :  { %s4004_s26 = smov 0   ;;  %s4006_s27 = smov 0  }
   0xb   :  { %s4008_s28 = smov 0   ;;  %s4010_s29 = smov 0  }
   0xc LB: > { %s4599_s30 = sadd.s32 4294967295, %s3938_s29   ;;  %p2699_p0 = scmp.ge.s32.totalorder %s3938_s29, 1  ;;  %s3938_s29 = sphi %s4010_s29, %s26_s29   ;;  %s3934_s28 = sphi %s4008_s28, %s4634_s28   ;;  %s3930_s27 = sphi %s4006_s27, %s4633_s27   ;;  %s3926_s26 = sphi %s4004_s26, %s4632_s26   ;;  %s3922_s25 = sphi %s4002_s25, %s4631_s25   ;;  %s3918_s24 = sphi %s4000_s24, %s4630_s24  }
   0xd   : > { %p4034_p1 = scmp.eq.s32.totalorder %s4599_s30, 0  ;;  %p223_p2 = scmp.lt.s32.totalorder %s3938_s29, 3 }
   0xe   : > { %s3940_s10 = smov [#allocation6]   ;;  %s3941_s13 = smov [#allocation9]  }
   0xf   : > { %s4610_s8 = scalar_select %p4034_p1, 1, 0 }
  0x10   : > { %p4039_p3 = pnand %p2699_p0, %p223_p2  ;;  %s235_s11 = sshll.u32 %s3940_s10, 4  ;;  %s4043_s11 = int_to_ptr.vmem [resolvable:$true] %s235_s11 }
  0x11   : > { %s261_s14 = sshll.u32 %s3941_s13, 4  ;;  %s3942_s15 = smov [#allocation12]   ;;  %s4054_s14 = int_to_ptr.vmem [resolvable:$true] %s261_s14 }
  0x12   : > { %s4611_s9 = scalar_select %p4039_p3, 1, 0 }
  0x13   : > { %p3387_p4 = pneg %p4039_p3  ;;  %s4056_s16 = sshll.u32 %s3942_s15, 4  ;;  %s289_s16 = int_to_ptr.vmem [resolvable:$true] %s4056_s16 }
  0x14   : > { %s4613_s1 = sld [smem:[#allocation21_spill]] }
  0x15   : > { %p4050_p6 = pnand %p3387_p4, %p4034_p1 }
  0x17   : > { %p4066_p8 = pneg %p4050_p6 }
  0x1a   : > { %s3646_s19 = scalar_lea.hbm %s4613_s1, 512 }
  0x1b   : > { %p3647_p7 = scmp.ne.s32.totalorder %s4613_s1, %s3646_s19  ;;  %p3653_p11 = scmp.lt.u32.totalorder %s3646_s19, %s4613_s1 }
  0x1d   : > { %p3649_p9 = pnand %p4066_p8, %p3647_p7 }
  0x1f   : > { %p3650_p10 = pneg %p3649_p9 }
  0x21   : > { %p3655_p12 = pnand %p3653_p11, %p3650_p10 }
  0x23   : > { %3658 = shalt.err (!%p3655_p12)
}
  0x24   : > { %s3659_s13 = scalar_lea.vmem %s4043_s11, 512  ;;  %p3667_p4 = scmp.lt.s32.totalorder %s4043_s11, %s4043_s11 }
  0x25   : > { %p3660_p13 = scmp.ne.s32.totalorder %s4043_s11, %s3659_s13  ;;  %p3668_p5 = scmp.lt.s32.totalorder %s3659_s13, %s3659_s13 }
  0x27   : > { %p3662_p0 = pnand %p3660_p13, %p4066_p8  ;;  %p3669_p7 = por %p3668_p5, %p3667_p4 }
  0x29   : > { %p3663_p2 = pneg %p3662_p0 }
  0x2b   : > { %p3670_p9 = pnand %p3669_p7, %p3663_p2 }
  0x2d   : > { %3673 = shalt.err (!%p3670_p9)
}
  0x2e   : > { %s4604_s15 = smov 128   ;;  %s4606_s17 = smov 8  }
  0x2f   : > { %3390 = dma.hbm_to_vmem [thread:$0]  (!%p4050_p6), %s4613_s1, 512, %s4043_s11, [#allocation7], %s4604_s15, %s4604_s15, %s4606_s17  }
  0x30   : > { %s3674_s23 = scalar_lea.hbm %s4594_s3, 7680 }
  0x31   : > { %p3675_p5 = scmp.ne.s32.totalorder %s4594_s3, %s3674_s23  ;;  %p3681_p12 = scmp.lt.u32.totalorder %s3674_s23, %s4594_s3 }
  0x33   : > { %p3677_p10 = pnand %p3675_p5, %p4066_p8 }
  0x35   : > { %p3678_p11 = pneg %p3677_p10 }
  0x37   : > { %p3683_p13 = pnand %p3681_p12, %p3678_p11 }
  0x39   : > { %3686 = shalt.err (!%p3683_p13)
}
  0x3a   : > { %s3687_s11 = scalar_lea.vmem %s4054_s14, 7680  ;;  %p3695_p7 = scmp.lt.s32.totalorder %s4054_s14, %s4054_s14 }
  0x3b   : > { %p3688_p0 = scmp.ne.s32.totalorder %s4054_s14, %s3687_s11  ;;  %p3696_p9 = scmp.lt.s32.totalorder %s3687_s11, %s3687_s11 }
  0x3d   : > { %p3690_p2 = pnand %p3688_p0, %p4066_p8  ;;  %p3697_p5 = por %p3696_p9, %p3695_p7 }
  0x3f   : > { %p3691_p4 = pneg %p3690_p2 }
  0x41   : > { %p3698_p10 = pnand %p3697_p5, %p3691_p4 }
  0x43   : > { %3701 = shalt.err (!%p3698_p10)
}
  0x44   : > { %3396 = dma.hbm_to_vmem [thread:$0]  (!%p4050_p6), %s4594_s3, 7680, %s4054_s14, [#allocation10], %s4604_s15, %s4604_s15, %s4606_s17  }
  0x45   : > { %s3702_s20 = scalar_lea.hbm %s4596_s5, 128 }
  0x46   : > { %p3703_p11 = scmp.ne.s32.totalorder %s4596_s5, %s3702_s20  ;;  %p3709_p0 = scmp.lt.u32.totalorder %s3702_s20, %s4596_s5 }
  0x48   : > { %p3705_p12 = pnand %p3703_p11, %p4066_p8 }
  0x4a   : > { %p3706_p13 = pneg %p3705_p12 }
  0x4c   : > { %p3711_p2 = pnand %p3709_p0, %p3706_p13 }
  0x4e   : > { %3714 = shalt.err (!%p3711_p2)
}
  0x4f   : > { %s3715_s11 = scalar_lea.vmem %s289_s16, 128  ;;  %p3723_p5 = scmp.lt.s32.totalorder %s289_s16, %s289_s16 }
  0x50   : > { %p3716_p4 = scmp.ne.s32.totalorder %s289_s16, %s3715_s11  ;;  %p3724_p10 = scmp.lt.s32.totalorder %s3715_s11, %s3715_s11 }
  0x52   : > { %p3718_p7 = pnand %p3716_p4, %p4066_p8  ;;  %p3725_p3 = por %p3724_p10, %p3723_p5 }
  0x54   : > { %p3719_p9 = pneg %p3718_p7 }
  0x56   : > { %p3726_p1 = pnand %p3725_p3, %p3719_p9 }
  0x58   : > { %3729 = shalt.err (!%p3726_p1)
}
  0x59   : > { %3402 = dma.hbm_to_vmem [thread:$0]  (!%p4050_p6), %s4596_s5, 128, %s289_s16, [#allocation13]  }
  0x5a   : > { %s3945_s30 = smov [#allocation8]   ;;  %s3946_s19 = smov [#allocation11]  }
  0x5b   : > { %s248_s18 = sshll.u32 %s3945_s30, 4  ;;  %s274_s20 = sshll.u32 %s3946_s19, 4  ;;  %s249_s18 = int_to_ptr.vmem [resolvable:$true] %s248_s18  ;;  %s275_s20 = int_to_ptr.vmem [resolvable:$true] %s274_s20 }
  0x5c   : > { %s3730_s10 = scalar_lea.hbm %s4593_s2, 512 }
  0x5d   : > { %p3731_p1 = scmp.ne.s32.totalorder %s4593_s2, %s3730_s10  ;;  %p3737_p12 = scmp.lt.u32.totalorder %s3730_s10, %s4593_s2 }
  0x5f   : > { %p3733_p3 = pnand %p3731_p1, %p4066_p8 }
  0x61   : > { %p3734_p11 = pneg %p3733_p3 }
  0x63   : > { %p3739_p13 = pnand %p3737_p12, %p3734_p11 }
  0x65   : > { %3742 = shalt.err (!%p3739_p13)
}
  0x66   : > { %s3743_s16 = scalar_lea.vmem %s249_s18, 512  ;;  %p3751_p7 = scmp.lt.s32.totalorder %s249_s18, %s249_s18 }
  0x67   : > { %p3744_p0 = scmp.ne.s32.totalorder %s249_s18, %s3743_s16  ;;  %p3752_p9 = scmp.lt.s32.totalorder %s3743_s16, %s3743_s16 }
  0x69   : > { %p3746_p2 = pnand %p3744_p0, %p4066_p8  ;;  %p3753_p5 = por %p3752_p9, %p3751_p7 }
  0x6b   : > { %p3747_p4 = pneg %p3746_p2 }
  0x6d   : > { %p3754_p10 = pnand %p3753_p5, %p3747_p4 }
  0x6f   : > { %3757 = shalt.err (!%p3754_p10)
}
  0x70   : > { %s4615_s7 = smov 128   ;;  %s3758_s23 = scalar_lea.hbm %s4595_s4, 1536 }
  0x71   : > { %3393 = dma.hbm_to_vmem [thread:$0]  (!%p4050_p6), %s4593_s2, 512, %s249_s18, [#allocation7], %s4615_s7, %s4615_s7, %s4606_s17  }
  0x72   : > { %p3759_p1 = scmp.ne.s32.totalorder %s4595_s4, %s3758_s23  ;;  %p3765_p12 = scmp.lt.u32.totalorder %s3758_s23, %s4595_s4 }
  0x74   : > { %p3761_p3 = pnand %p3759_p1, %p4066_p8 }
  0x76   : > { %p3762_p11 = pneg %p3761_p3 }
  0x78   : > { %p3767_p13 = pnand %p3765_p12, %p3762_p11 }
  0x7a   : > { %3770 = shalt.err (!%p3767_p13)
}
  0x7b   : > { %s3771_s16 = scalar_lea.vmem %s275_s20, 1536  ;;  %p3779_p7 = scmp.lt.s32.totalorder %s275_s20, %s275_s20 }
  0x7c   : > { %p3772_p0 = scmp.ne.s32.totalorder %s275_s20, %s3771_s16  ;;  %p3780_p9 = scmp.lt.s32.totalorder %s3771_s16, %s3771_s16 }
  0x7e   : > { %p3774_p2 = pnand %p3772_p0, %p4066_p8  ;;  %p3781_p5 = por %p3780_p9, %p3779_p7 }
  0x80   : > { %p3775_p4 = pneg %p3774_p2 }
  0x82   : > { %p3782_p10 = pnand %p3781_p5, %p3775_p4 }
  0x84   : > { %3785 = shalt.err (!%p3782_p10)
}
  0x85   : > { %3399 = dma.hbm_to_vmem [thread:$0]  (!%p4050_p6), %s4595_s4, 1536, %s275_s20, [#allocation10], %s4615_s7, %s4615_s7, %s4606_s17  }
  0x86   : > { %s3947_s30 = smov [#allocation14]   ;;  %s3786_s10 = scalar_lea.hbm %s4597_s6, 128 }
  0x87   : > { %s299_s19 = sshll.u32 %s3947_s30, 4  ;;  %p3787_p1 = scmp.ne.s32.totalorder %s4597_s6, %s3786_s10  ;;  %s300_s19 = int_to_ptr.vmem [resolvable:$true] %s299_s19 }
  0x88   : > { %p3793_p12 = scmp.lt.u32.totalorder %s3786_s10, %s4597_s6 }
  0x89   : > { %p3789_p3 = pnand %p3787_p1, %p4066_p8 }
  0x8b   : > { %p3790_p11 = pneg %p3789_p3 }
  0x8d   : > { %p3795_p13 = pnand %p3793_p12, %p3790_p11 }
  0x8f   : > { %3798 = shalt.err (!%p3795_p13)
}
  0x90   : > { %s3799_s20 = scalar_lea.vmem %s300_s19, 128  ;;  %p3807_p7 = scmp.lt.s32.totalorder %s300_s19, %s300_s19 }
  0x91   : > { %p3800_p0 = scmp.ne.s32.totalorder %s300_s19, %s3799_s20  ;;  %p3808_p9 = scmp.lt.s32.totalorder %s3799_s20, %s3799_s20 }
  0x93   : > { %p3802_p2 = pnand %p3800_p0, %p4066_p8  ;;  %p3809_p5 = por %p3808_p9, %p3807_p7 }
  0x95   : > { %p3803_p4 = pneg %p3802_p2 }
  0x97   : > { %p3810_p10 = pnand %p3809_p5, %p3803_p4 }
  0x99   : > { %3813 = shalt.err (!%p3810_p10)
}
  0x9a   : > { %3405 = dma.hbm_to_vmem [thread:$0]  (!%p4050_p6), %s4597_s6, 128, %s300_s19, [#allocation13]  }
  0x9b   : > { %s2698_s22 = sadd.s32 4294967294, %s3938_s29   ;;  %s38_s30 = sadd.s32 1, %s3934_s28 }
  0x9c   : > { %p40_p8 = scmp.ge.s32.totalorder %s38_s30, 2  ;;  %s47_s12 = sadd.s32 1, %s3926_s26 }
  0x9d   : > { %p54_p1 = scmp.ne.s32.totalorder %s3926_s26, %s3922_s25  ;;  %p55_p3 = scmp.eq.s32.totalorder %s3938_s29, 0 }
  0x9e   : > { %s4636_s30 = smov (%p40_p8, %s38_s30), 0  ;;  %p60_p12 = scmp.ne.s32.totalorder %s3922_s25, %s3918_s24 }
  0x9f   : > { %p4203_p11 = por %p55_p3, %p54_p1  ;;  %s42_s19 = ssub.s32 %s3934_s28, %s4636_s30 }
  0xa0   : > { %s4617_s23 = sadd.s32 4294967295, %s3938_s29   ;;  %p45_p13 = scmp.eq.s32.totalorder %s42_s19, 0 }
  0xa1   : > { %p210_p6 = scmp.eq.s32.totalorder %s4617_s23, 1  ;;  %p4618_p0 = scmp.ne.s32.totalorder %s4610_s8, 0 }
  0xa2   : > { %p216_p7 = scmp.eq.s32.totalorder %s2698_s22, 1  ;;  %p3420_p5 = scmp.lt.s32.totalorder %s3938_s29, 2 }
  0xa3   : > { %p4215_p2 = por %p4618_p0, %p60_p12  ;;  %p4219_p4 = por %p210_p6, %p54_p1 }
  0xa4   : > { %s4224_s11 = scalar_select %p45_p13, %s3926_s26, %s47_s12  }
  0xa5   : > { %s4620_s13 = scalar_select %p4219_p4, 1, 0 }
  0xa6   : > { %p4226_p9 = por %p216_p7, %p60_p12  ;;  %s310_s16 = sand.u32 1, %s3926_s26  }
  0xa7   : > { %s2788_s20 = sshll.u32 %s3934_s28, 10  ;;  %s2707_s18 = sshll.u32 %s310_s16, 6 }
  0xa8   : > { %s4621_s14 = scalar_select %p4226_p9, 1, 0 }
  0xa9   : > { %s4236_s23 = scalar_lea.hbm %s4591_s0, %s2788_s20  ;;  %s314_s22 = scalar_lea.vmem [#allocation3], %s2707_s18 }
  0xaa   : > { %s322_s12 = sshll.u32 %s314_s22, 4  ;;  %p4240_p10 = pnand %p3420_p5, %p4203_p11  ;;  %s4244_s12 = int_to_ptr.vmem [resolvable:$true] %s322_s12 }
  0xab   : > { %s4246_s1 = scalar_lea.sflag [#allocation4], %s310_s16  ;;  %s3814_s15 = scalar_lea.hbm %s4236_s23, 1024 }
  0xac   : > { %p3815_p8 = scmp.ne.s32.totalorder %s4236_s23, %s3814_s15  ;;  %p3816_p1 = pneg %p4240_p10 }
  0xad   : > { %s3819_s18 = scalar_lea.hbm %s4591_s0, 2048  ;;  %p3820_p11 = scmp.lt.u32.totalorder %s4236_s23, %s4591_s0 }
  0xae   : > { %p3817_p3 = pnand %p3816_p1, %p3815_p8  ;;  %p3821_p6 = scmp.lt.u32.totalorder %s3819_s18, %s3814_s15 }
  0xaf   : > { %p3823_p0 = scmp.lt.u32.totalorder %s3814_s15, %s4236_s23 }
  0xb0   : > { %p3818_p12 = pneg %p3817_p3  ;;  %p3822_p13 = por %p3821_p6, %p3820_p11 }
  0xb2   : > { %p3824_p7 = por %p3823_p0, %p3822_p13 }
  0xb4   : > { %p3825_p5 = pnand %p3824_p7, %p3818_p12 }
  0xb6   : > { %3828 = shalt.err (!%p3825_p5)
}
  0xb7   : > { %s3829_s16 = scalar_lea.vmem %s4244_s12, 1024  ;;  %s3948_s20 = smov [#allocation3]  }
  0xb8   : > { %p3830_p8 = scmp.ne.s32.totalorder %s4244_s12, %s3829_s16  ;;  %s3834_s21 = sshll.u32 %s3948_s20, 4  ;;  %s3835_s21 = int_to_ptr.vmem [resolvable:$false] %s3834_s21 }
  0xb9   : > { %s3836_s19 = scalar_lea.vmem %s3835_s21, 2048  ;;  %p3837_p4 = scmp.lt.s32.totalorder %s4244_s12, %s3835_s21 }
  0xba   : > { %p3832_p3 = pnand %p3830_p8, %p3816_p1  ;;  %p3838_p11 = scmp.lt.s32.totalorder %s3836_s19, %s3829_s16 }
  0xbc   : > { %p3833_p9 = pneg %p3832_p3  ;;  %p3839_p6 = por %p3838_p11, %p3837_p4 }
  0xbe   : > { %p3840_p13 = pnand %p3839_p6, %p3833_p9 }
  0xc0   : > { %3843 = shalt.err (!%p3840_p13)
}
  0xc1   : > { %s4623_s15 = smov 8   ;;  %p4624_p1 = scmp.ne.s32.totalorder %s4611_s9, 0 }
  0xc2   : > { %3409 = dma.hbm_to_vmem [thread:$0]  (!%p4240_p10), %s4236_s23, 1024, %s4244_s12, %s4246_s1, %s4615_s7, %s4615_s7, %s4623_s15  }
  0xc3   : > { %334 = sbr.rel (%p4624_p1) target bundleno = 1844 (0x734), region = 48  ;;  %s4280_s18 = sand.u32 (!%p4624_p1), 1, %s3922_s25  }
  0xc4   : > { %s2711_s22 = sshll.u32 (!%p4624_p1), %s4280_s18, 6  ;;  %s337_s16 = scalar_lea.sflag (!%p4624_p1), [#allocation4], %s4280_s18 }
  0xc5   : > { %s4284_s20 = scalar_lea.vmem (!%p4624_p1), [#allocation3], %s2711_s22 }
  0xca   : > { %3897 = dma.done.wait (%p4215_p2), %s337_s16, 1024  }
  0xcb   : > { %3899 = vsyncadd (%p4215_p2), %s337_s16, 4294966272  ;;  %p4625_p4 = scmp.ne.s32.totalorder %s4610_s8, 0 }
  0xcd   : > { %3901 = dma.done.wait (%p4625_p4), [#allocation7], 1024  }
  0xce   : > { %3903 = vsyncadd (%p4625_p4), [#allocation7], 4294966272 }
  0xcf   : > { %3905 = dma.done.wait (%p4625_p4), [#allocation10], 9216  }
  0xd0   : > { %3907 = vsyncadd (%p4625_p4), [#allocation10], 4294958080 }
  0xd1   : > { %3909 = dma.done.wait (%p4625_p4), [#allocation13], 256  }
  0xd2   : > { %3911 = vsyncadd (%p4625_p4), [#allocation13], 4294967040  ;;  %v3949_v0 = vmov 0   ;;  %v395_v1 = vld [vmem:[%s4284_s20] sm:$0xff]  ;;  %v396_v2 = vld [vmem:[%s4284_s20 + $0x8] sm:$0xff]  ;;  %vm431_vm0 = vcmask 523264  }
  0xd3   : > { %3494 = vset.pattern.permute.xlu0 %v3949_v0  ;;  %3495 = vset.pattern.permute.xlu1 %v3949_v0  ;;  %v397_v3 = vld [vmem:[%s4284_s20 + $0x10] sm:$0xff]  ;;  %v3169_v4 = vpack.c.bf16 %v396_v2, %v395_v1  ;;  %v398_v5 = vld [vmem:[%s4284_s20 + $0x18] sm:$0xff]  ;;  %v399_v7 = vld [vmem:[%s4284_s20 + $0x20] sm:$0xff]  ;;  %vm541_vm1 = vcmask 1048064   ;;  %v3950_v28 = vmov 0.0   ;;  %vm583_vm2 = vcmask 261120  }
  0xd4   : > { %v3173_v6 = vpack.c.bf16 %v398_v5, %v397_v3  ;;  %v400_v8 = vld [vmem:[%s4284_s20 + $0x28] sm:$0xff]  ;;  %v403_v9 = vld [vmem:[#allocation6] sm:$0xff]  ;;  %v409_v11 = vld [vmem:[#allocation8 + $0x10] sm:$0xff]  ;;  %s3951_s1 = smov 4   ;;  %s3952_s8 = smov 1   ;;  %vm701_vm3 = vcmask 31744  }
  0xd5   : > { %3170 = vmatprep.subr.bf16.mxu0 %v3169_v4  ;;  %2942 = vmatprep.mubr.msk.f32.mxu0 %vm431_vm0, %v403_v9  ;;  %v407_v10 = vld [vmem:[#allocation8] sm:$0xff]  ;;  %v3177_v12 = vpack.c.bf16 %v400_v8, %v399_v7  ;;  %v401_v13 = vld [vmem:[%s4284_s20 + $0x30] sm:$0xff]  ;;  %v402_v14 = vld [vmem:[%s4284_s20 + $0x38] sm:$0xff]  ;;  %s3953_s9 = smov 127   ;;  %s3954_s17 = smov 124   ;;  %vm828_vm4 = vcmask 7168  }
  0xd6   : > { %3172 = vmatpush3.bf16.msra.mxu0 %v3169_v4  ;;  %413 = vperm.xlu0 %3494, %v407_v10   ;;  %v408_v15 = vld [vmem:[#allocation8 + $0x8] sm:$0xff]  ;;  %v410_v16 = vld [vmem:[#allocation8 + $0x18] sm:$0xff]  ;;  %v3181_v17 = vpack.c.bf16 %v402_v14, %v401_v13  ;;  %v405_v19 = vld [vmem:[#allocation6 + $0x10] sm:$0xff]  ;;  %s3955_s7 = smov 126   ;;  %s3956_s10 = smov 2   ;;  %vm1353_vm5 = vcmask 15360  }
  0xd7   : > { %3174 = vmatprep.subr.bf16.mxu0 %v3173_v6  ;;  %423 = vperm.xlu1 %3495, %v409_v11   ;;  %v404_v18 = vld [vmem:[#allocation6 + $0x8] sm:$0xff]  ;;  %v406_v20 = vld [vmem:[#allocation6 + $0x18] sm:$0xff]  ;;  %v554_v38 = vld [vmem:[#allocation9] sm:$0xff]  ;;  %vm3958_vm6 = vmmov 0   ;;  %s2718_s23 = sshll.u32 %s4280_s18, 3  ;;  %s2785_s12 = sshll.u32 %s3930_s27, 7 }
  0xd8   : > { %2970 = vmatprep.mubr.msk.f32.mxu1 %vm583_vm2, %v554_v38  ;;  %v1163_v45 = vld [vmem:[#allocation11 + $0x8] sm:$0xff]  ;;  %v1162_v46 = vld [vmem:[#allocation11] sm:$0xff]  ;;  %v1165_v48 = vld [vmem:[#allocation11 + $0x18] sm:$0xff]  ;;  %s394_s21 = scalar_lea.vmem [#allocation15], %s2718_s23  ;;  %s4626_s16 = sld [smem:[#allocation22_spill]] }
  0xd9   : > { %v563_v47 = vld [vmem:[#allocation9 + $0x20] sm:$0xff]  ;;  %v1164_v49 = vld [vmem:[#allocation11 + $0x10] sm:$0xff]  ;;  %s2560_s19 = sshll.u32 %s394_s21, 4  ;;  %p4627_p9 = scmp.ne.s32.totalorder %s4620_s13, 0  ;;  %s4543_s19 = int_to_ptr.vmem [resolvable:$true] %s2560_s19 }
  0xda   : > { %3176 = vmatpush3.bf16.msra.mxu0 %v3173_v6  ;;  %418 = vperm.xlu0 %3494, %v408_v15   ;;  %s3844_s27 = scalar_lea.vmem %s4543_s19, 128 }
  0xdb   : > { %3178 = vmatprep.subr.bf16.mxu0 %v3177_v12  ;;  %428 = vperm.xlu1 %3495, %v410_v16   ;;  %p3845_p2 = scmp.ne.s32.totalorder %s4543_s19, %s3844_s27 }
  0xdd   : > { %p3846_p10 = pnand %p3845_p2, %p4627_p9 }
  0xde   : > { %3180 = vmatpush3.bf16.msra.mxu0 %v3177_v12  ;;  %v555_v12 = vld [vmem:[#allocation9 + $0x8] sm:$0xff]  ;;  %s4541_s20 = scalar_lea.hbm %s4626_s16, %s2785_s12 }
  0xdf   : > { %3182 = vmatprep.subr.bf16.mxu0 %v3181_v17  ;;  %p3847_p12 = pneg %p3846_p10 }
  0xe2   : > { %3184 = vmatpush3.bf16.msra.mxu0 %v3181_v17 }
  0xe5   : > { %2943 = vmatmul.mubr.msk.f32.vlgmr.msra.gmra.mrb[0].mxu0 %vm431_vm0, %v404_v18  ;;  %v556_v18 = vld [vmem:[#allocation9 + $0x10] sm:$0xff] }
  0xe6   : > { %2945 = vmatprep.mubr.msk.f32.mxu0 %vm431_vm0, %v405_v19 }
  0xe9   : > { %2946 = vmatmul.mubr.msk.f32.gmra.mrb[2].mxu0 %vm431_vm0, %v406_v20 }
  0xea   : > { %2956 = vmatprep.mubr.msk.f32.mxu0 %vm583_vm2, %v563_v47 }
 0x155   : > { %v414_v21 = vpop.permute.xlu0 %413 }
 0x156   : > { %v424_v22 = vpop.permute.xlu1 %423 }
 0x159   : > { %v419_v23 = vpop.permute.xlu0 %418 }
 0x15a   : > { %v429_v29 = vpop.permute.xlu1 %428 }
 0x1b8   : > { %v2944_v24 = vpop.f32.mrb[0].mxu0 }
 0x1b9   : > { %v516_v25 = vadd.f32 %v2944_v24, %v419_v23  ;;  %v510_v26 = vpop.f32.mrb[1].mxu0 }
 0x1ba   : > { %v511_v27 = vadd.f32 %v510_v26, %v414_v21 }
 0x1bb   : > { %530 = vst.msk [vmem:[#allocation2 + $0x20] sm:$0xff] %vm431_vm0, %v516_v25 }
 0x1bc   : > { %544 = vst.msk [vmem:[#allocation2 + $0x20] sm:$0xff] %vm541_vm1, %v3950_v28  ;;  %v2947_v30 = vpop.f32.mrb[2].mxu0 }
 0x1bd   : > { %529 = vst.msk [vmem:[#allocation2 + $0x8] sm:$0xff] %vm431_vm0, %v511_v27  ;;  %v526_v31 = vadd.f32 %v2947_v30, %v429_v29  ;;  %v520_v32 = vpop.f32.mrb[3].mxu0  ;;  %v808_v30 = vld [vmem:[#allocation9 + $0x40] sm:$0xff] }
 0x1be   : > { %542 = vst.msk [vmem:[#allocation2 + $0x8] sm:$0xff] %vm541_vm1, %v3950_v28  ;;  %v521_v33 = vadd.f32 %v520_v32, %v424_v22  ;;  %v557_v22 = vld [vmem:[#allocation9 + $0x18] sm:$0xff] }
 0x1bf   : > { %532 = vst.msk [vmem:[#allocation2 + $0x50] sm:$0xff] %vm431_vm0, %v526_v31 }
 0x1c0   : > { %548 = vst.msk [vmem:[#allocation2 + $0x50] sm:$0xff] %vm541_vm1, %v3950_v28 }
 0x1c1   : > { %531 = vst.msk [vmem:[#allocation2 + $0x38] sm:$0xff] %vm431_vm0, %v521_v33 }
 0x1c2   : > { %546 = vst.msk [vmem:[#allocation2 + $0x38] sm:$0xff] %vm541_vm1, %v3950_v28 }
 0x1c3   : > { %v4326_v34 = vld [vmem:[#allocation2 + $0x20] sm:$0xff] }
 0x1c4   : > { %v3496_v35 = vpack.i.bf16 %v4326_v34, %v3950_v28 }
 0x1c5   : > { %v4330_v36 = vld [vmem:[#allocation2 + $0x8] sm:$0xff] }
 0x1c6   : > { %v3501_v37 = vpack.i.bf16 %v4330_v36, %v3950_v28  ;;  %3497 = vrot.lane.b32.xlu1 %v3496_v35, %s3951_s1  ;;  %v3536_v44 = vpack.i.bf16 %v4326_v34, %v4330_v36 }
 0x1c7   : > { %v4337_v39 = vld [vmem:[#allocation2 + $0x50] sm:$0xff] }
 0x1c8   : > { %3502 = vrot.lane.b32.xlu0 %v3501_v37, %s3951_s1  ;;  %v3506_v40 = vpack.i.bf16 %v4337_v39, %v3950_v28 }
 0x1c9   : > { %v4341_v41 = vld [vmem:[#allocation2 + $0x38] sm:$0xff] }
 0x1ca   : > { %v3511_v42 = vpack.i.bf16 %v4341_v41, %v3950_v28  ;;  %3507 = vrot.lane.b32.xlu1 %v3506_v40, %s3951_s1  ;;  %v3541_v43 = vpack.i.bf16 %v4337_v39, %v4341_v41 }
 0x1cc   : > { %3512 = vrot.lane.b32.xlu0 %v3511_v42, %s3951_s1 }
 0x1ce   : > { %3522 = vrot.lane.b32.xlu1 %v3496_v35, %s3952_s8  ;;  %v809_v35 = vld [vmem:[#allocation9 + $0x48] sm:$0xff] }
 0x1d0   : > { %3517 = vrot.lane.b32.xlu0 %v3501_v37, %s3952_s8 }
 0x1d2   : > { %3532 = vrot.lane.b32.xlu1 %v3506_v40, %s3952_s8 }
 0x1d4   : > { %3527 = vrot.lane.b32.xlu0 %v3511_v42, %s3952_s8  ;;  %v810_v42 = vld [vmem:[#allocation9 + $0x50] sm:$0xff] }
 0x1d6   : > { %3542 = vrot.lane.b32.xlu1 %v3541_v43, %s3953_s9 }
 0x1d8   : > { %3537 = vrot.lane.b32.xlu0 %v3536_v44, %s3953_s9 }
 0x1da   : > { %3552 = vrot.lane.b32.xlu1 %v3541_v43, %s3954_s17 }
 0x1dc   : > { %3547 = vrot.lane.b32.xlu0 %v3536_v44, %s3954_s17 }
 0x1de   : > { %1173 = vperm.xlu1 %3495, %v1163_v45  }
 0x1e0   : > { %1168 = vperm.xlu0 %3494, %v1162_v46  }
 0x1e2   : > { %1183 = vperm.xlu1 %3495, %v1165_v48   ;;  %v811_v48 = vld [vmem:[#allocation9 + $0x58] sm:$0xff] }
 0x1e4   : > { %1178 = vperm.xlu0 %3494, %v1164_v49  }
 0x238   : > { %v3498_v50 = vpop.permute.xlu1 %3497 }
 0x239   : > { %v3500_v51 = vunpack.i.h.bf16 %v3498_v50  ;;  %v3499_v52 = vunpack.i.l.bf16 %v3498_v50  ;;  %v939_v50 = vld [vmem:[#allocation9 + $0x60] sm:$0xff] }
 0x23a   : > { %v3503_v53 = vpop.permute.xlu0 %3502 }
 0x23b   : > { %v3505_v54 = vunpack.i.h.bf16 %v3503_v53  ;;  %v3504_v55 = vunpack.i.l.bf16 %v3503_v53  ;;  %v703_v56 = vsel %vm701_vm3, %v3499_v52, %v3500_v51  ;;  %v3217_v51 = vpack.c.bf16 %v4326_v34, %v4330_v36  ;;  %v940_v52 = vld [vmem:[#allocation9 + $0x68] sm:$0xff]  ;;  %v941_v53 = vld [vmem:[#allocation9 + $0x70] sm:$0xff] }
 0x23c   : > { %v3508_v57 = vpop.permute.xlu1 %3507 }
 0x23d   : > { %v702_v58 = vsel %vm701_vm3, %v3504_v55, %v3505_v54  ;;  %v3510_v59 = vunpack.i.h.bf16 %v3508_v57  ;;  %v3509_v60 = vunpack.i.l.bf16 %v3508_v57  ;;  %v3221_v54 = vpack.c.bf16 %v4337_v39, %v4341_v41  ;;  %v564_v55 = vld [vmem:[#allocation9 + $0x28] sm:$0xff]  ;;  %v565_v57 = vld [vmem:[#allocation9 + $0x30] sm:$0xff] }
 0x23e   : > { %v3513_v61 = vpop.permute.xlu0 %3512  ;;  %v3193_v62 = vpack.c.bf16 %v703_v56, %v702_v58  ;;  %v942_v56 = vld [vmem:[#allocation9 + $0x78] sm:$0xff]  ;;  %v1057_v58 = vld [vmem:[#allocation9 + $0x80] sm:$0xff] }
 0x23f   : > { %v3515_v63 = vunpack.i.h.bf16 %v3513_v61  ;;  %v3514_v0 = vunpack.i.l.bf16 %v3513_v61  ;;  %v705_v1 = vsel %vm701_vm3, %v3509_v60, %v3510_v59  ;;  %v566_v59 = vld [vmem:[#allocation9 + $0x38] sm:$0xff]  ;;  %v1058_v60 = vld [vmem:[#allocation9 + $0x88] sm:$0xff]  ;;  %v1059_v61 = vld [vmem:[#allocation9 + $0x90] sm:$0xff] }
 0x240   : > { %3194 = vmatprep.subr.bf16.mxu1 %v3193_v62  ;;  %v3523_v2 = vpop.permute.xlu1 %3522 }
 0x241   : > { %3196 = vmatpush3.bf16.msra.mxu1 %v3193_v62  ;;  %v704_v3 = vsel %vm701_vm3, %v3514_v0, %v3515_v63  ;;  %v3525_v4 = vunpack.i.h.bf16 %v3523_v2  ;;  %v3524_v5 = vunpack.i.l.bf16 %v3523_v2  ;;  %v1060_v62 = vld [vmem:[#allocation9 + $0x98] sm:$0xff] }
 0x242   : > { %v3518_v6 = vpop.permute.xlu0 %3517  ;;  %v3197_v7 = vpack.c.bf16 %v705_v1, %v704_v3 }
 0x243   : > { %v3520_v8 = vunpack.i.h.bf16 %v3518_v6  ;;  %v3519_v9 = vunpack.i.l.bf16 %v3518_v6  ;;  %v830_v10 = vsel %vm828_vm4, %v3524_v5, %v3525_v4 }
 0x244   : > { %3198 = vmatprep.subr.bf16.mxu1 %v3197_v7  ;;  %v3533_v11 = vpop.permute.xlu1 %3532 }
 0x245   : > { %3200 = vmatpush3.bf16.msra.mxu1 %v3197_v7  ;;  %v829_v13 = vsel %vm828_vm4, %v3519_v9, %v3520_v8  ;;  %v3535_v14 = vunpack.i.h.bf16 %v3533_v11  ;;  %v3534_v15 = vunpack.i.l.bf16 %v3533_v11 }
 0x246   : > { %v3528_v16 = vpop.permute.xlu0 %3527  ;;  %v3201_v17 = vpack.c.bf16 %v830_v10, %v829_v13 }
 0x247   : > { %v3530_v19 = vunpack.i.h.bf16 %v3528_v16  ;;  %v3529_v20 = vunpack.i.l.bf16 %v3528_v16  ;;  %v832_v21 = vsel %vm828_vm4, %v3534_v15, %v3535_v14 }
 0x248   : > { %2971 = vmatmul.mubr.msk.f32.vlgmr.msra.gmra.mrb[0].mxu1 %vm583_vm2, %v555_v12  ;;  %3202 = vmatprep.subr.bf16.mxu1 %v3201_v17  ;;  %v3543_v24 = vpop.permute.xlu1 %3542 }
 0x249   : > { %3204 = vmatpush3.bf16.msra.mxu1 %v3201_v17  ;;  %2973 = vmatprep.mubr.msk.f32.mxu1 %vm583_vm2, %v556_v18  ;;  %v831_v23 = vsel %vm828_vm4, %v3529_v20, %v3530_v19  ;;  %v3545_v27 = vunpack.i.h.bf16 %v3543_v24  ;;  %v3544_v29 = vunpack.i.l.bf16 %v3543_v24 }
 0x24a   : > { %v3538_v25 = vpop.permute.xlu0 %3537  ;;  %v3205_v26 = vpack.c.bf16 %v832_v21, %v831_v23 }
 0x24b   : > { %v3540_v31 = vunpack.i.h.bf16 %v3538_v25  ;;  %v3539_v32 = vunpack.i.l.bf16 %v3538_v25  ;;  %v3213_v38 = vpack.c.bf16 %v3545_v27, %v3544_v29  ;;  %v1216_v29 = vld [vmem:[#allocation9 + $0xc0] sm:$0xff] }
 0x24c   : > { %2974 = vmatmul.mubr.msk.f32.gmra.mrb[2].mxu1 %vm583_vm2, %v557_v22  ;;  %3206 = vmatprep.subr.bf16.mxu1 %v3205_v26  ;;  %v3553_v37 = vpop.permute.xlu1 %3552 }
 0x24d   : > { %v3209_v33 = vpack.c.bf16 %v3540_v31, %v3539_v32  ;;  %3208 = vmatpush3.bf16.msra.mxu1 %v3205_v26  ;;  %2984 = vmatprep.mubr.msk.f32.mxu1 %vm583_vm2, %v808_v30  ;;  %v3555_v43 = vunpack.i.h.bf16 %v3553_v37  ;;  %v3554_v44 = vunpack.i.l.bf16 %v3553_v37 }
 0x24e   : > { %v3548_v40 = vpop.permute.xlu0 %3547 }
 0x24f   : > { %3210 = vmatprep.subr.bf16.mxu1 %v3209_v33  ;;  %v3550_v45 = vunpack.i.h.bf16 %v3548_v40  ;;  %v3549_v46 = vunpack.i.l.bf16 %v3548_v40  ;;  %v3189_v49 = vpack.c.bf16 %v3555_v43, %v3554_v44  ;;  %v1779_v40 = vld [vmem:[#allocation11 + $0x28] sm:$0xff] }
 0x250   : > { %2985 = vmatmul.mubr.msk.f32.vlgmr.msra.gmra.mrb[0].mxu1 %vm583_vm2, %v809_v35  ;;  %v1778_v35 = vld [vmem:[#allocation11 + $0x20] sm:$0xff] }
 0x251   : > { %3212 = vmatpush3.bf16.msra.mxu1 %v3209_v33  ;;  %v3185_v47 = vpack.c.bf16 %v3550_v45, %v3549_v46  ;;  %2987 = vmatprep.mubr.msk.f32.mxu1 %vm583_vm2, %v810_v42  ;;  %v1781_v42 = vld [vmem:[#allocation11 + $0x38] sm:$0xff] }
 0x252   : > { %3214 = vmatprep.subr.bf16.mxu1 %v3213_v38 }
 0x253   : > { %3186 = vmatprep.subr.bf16.mxu0 %v3185_v47 }
 0x254   : > { %2988 = vmatmul.mubr.msk.f32.gmra.mrb[2].mxu1 %vm583_vm2, %v811_v48  ;;  %3188 = vmatpush3.bf16.msra.mxu0 %v3185_v47 }
 0x255   : > { %3216 = vmatpush3.bf16.msra.mxu1 %v3213_v38  ;;  %2998 = vmatprep.mubr.msk.f32.mxu1 %vm583_vm2, %v939_v50  ;;  %v1780_v38 = vld [vmem:[#allocation11 + $0x30] sm:$0xff] }
 0x256   : > { %3218 = vmatprep.subr.bf16.mxu1 %v3217_v51  ;;  %3190 = vmatprep.subr.bf16.mxu0 %v3189_v49 }
 0x258   : > { %2999 = vmatmul.mubr.msk.f32.vlgmr.msra.gmra.mrb[0].mxu1 %vm583_vm2, %v940_v52  ;;  %3192 = vmatpush3.bf16.msra.mxu0 %v3189_v49 }
 0x259   : > { %3220 = vmatpush3.bf16.msra.mxu1 %v3217_v51  ;;  %3001 = vmatprep.mubr.msk.f32.mxu1 %vm583_vm2, %v941_v53 }
 0x25a   : > { %3222 = vmatprep.subr.bf16.mxu1 %v3221_v54 }
 0x25b   : > { %2957 = vmatmul.mubr.msk.f32.vlgmr.msra.gmra.mrb[4].mxu0 %vm583_vm2, %v564_v55 }
 0x25c   : > { %3002 = vmatmul.mubr.msk.f32.gmra.mrb[2].mxu1 %vm583_vm2, %v942_v56  ;;  %2959 = vmatprep.mubr.msk.f32.mxu0 %vm583_vm2, %v565_v57 }
 0x25d   : > { %3224 = vmatpush3.bf16.msra.mxu1 %v3221_v54  ;;  %3012 = vmatprep.mubr.msk.f32.mxu1 %vm583_vm2, %v1057_v58  ;;  %v1174_v1 = vpop.permute.xlu1 %1173  ;;  %v1217_v58 = vld [vmem:[#allocation9 + $0xc8] sm:$0xff] }
 0x25f   : > { %2960 = vmatmul.mubr.msk.f32.gmra.mrb[6].mxu0 %vm583_vm2, %v566_v59  ;;  %v1169_v5 = vpop.permute.xlu0 %1168 }
 0x260   : > { %3013 = vmatmul.mubr.msk.f32.vlgmr.msra.gmra.mrb[0].mxu1 %vm583_vm2, %v1058_v60  ;;  %3026 = vmatprep.mubr.msk.f32.mxu0 %vm583_vm2, %v1216_v29 }
 0x261   : > { %3015 = vmatprep.mubr.msk.f32.mxu1 %vm583_vm2, %v1059_v61  ;;  %v1184_v15 = vpop.permute.xlu1 %1183 }
 0x263   : > { %v1179_v18 = vpop.permute.xlu0 %1178 }
 0x264   : > { %3016 = vmatmul.mubr.msk.f32.gmra.mrb[2].mxu1 %vm583_vm2, %v1060_v62 }
 0x32e   : > { %v2958_v63 = vpop.f32.mrb[4].mxu0 }
 0x32f   : > { %v662_v0 = vpop.f32.mrb[5].mxu0 }
 0x332   : > { %v2961_v2 = vpop.f32.mrb[6].mxu0 }
 0x333   : > { %v3014_v3 = vpop.f32.mrb[0].mxu1  ;;  %v672_v4 = vpop.f32.mrb[7].mxu0 }
 0x334   : > { %v3311_v6 = vadd.f32 %v3014_v3, %v2958_v63  ;;  %v1139_v7 = vpop.f32.mrb[1].mxu1  ;;  %v1218_v63 = vld [vmem:[#allocation9 + $0xd0] sm:$0xff] }
 0x335   : > { %v3312_v8 = vadd.f32 %v1139_v7, %v662_v0  ;;  %v1203_v7 = vld [vmem:[#allocation9 + $0xa0] sm:$0xff] }
 0x336   : > { %v1187_v9 = vadd.f32 %v3311_v6, %v1174_v1 }
 0x337   : > { %v1186_v10 = vadd.f32 %v3312_v8, %v1169_v5  ;;  %v3017_v11 = vpop.f32.mrb[2].mxu1 }
 0x338   : > { %v1191_v12 = vmax.f32 %v1187_v9, 0.0  ;;  %v3313_v13 = vadd.f32 %v3017_v11, %v2961_v2  ;;  %v1149_v14 = vpop.f32.mrb[3].mxu1  ;;  %v1204_v9 = vld [vmem:[#allocation9 + $0xa8] sm:$0xff]  ;;  %v1206_v11 = vld [vmem:[#allocation9 + $0xb8] sm:$0xff] }
 0x339   : > { %v1190_v16 = vmax.f32 %v1186_v10, 0.0  ;;  %v3314_v17 = vadd.f32 %v1149_v14, %v672_v4  ;;  %v1219_v4 = vld [vmem:[#allocation9 + $0xd8] sm:$0xff]  ;;  %v1205_v10 = vld [vmem:[#allocation9 + $0xb0] sm:$0xff] }
 0x33a   : > { %v4391_v19 = vadd.f32 %v1191_v12, %v4326_v34  ;;  %v1189_v20 = vadd.f32 %v3313_v13, %v1184_v15  ;;  %v1460_v12 = vld [vmem:[#allocation9 + $0xe0] sm:$0xff]  ;;  %v1461_v13 = vld [vmem:[#allocation9 + $0xe8] sm:$0xff]  ;;  %v1462_v14 = vld [vmem:[#allocation9 + $0xf0] sm:$0xff] }
 0x33b   : > { %v4394_v21 = vadd.f32 %v1190_v16, %v4330_v36  ;;  %v1188_v22 = vadd.f32 %v3314_v17, %v1179_v18  ;;  %v1463_v15 = vld [vmem:[#allocation9 + $0xf8] sm:$0xff]  ;;  %v1566_v16 = vld [vmem:[#allocation9 + $0x100] sm:$0xff]  ;;  %v1567_v18 = vld [vmem:[#allocation9 + $0x108] sm:$0xff] }
 0x33c   : > { %1199 = vst.msk [vmem:[#allocation2 + $0x20] sm:$0xff] %vm431_vm0, %v4391_v19  ;;  %v1193_v23 = vmax.f32 %v1189_v20, 0.0  ;;  %v1568_v20 = vld [vmem:[#allocation9 + $0x110] sm:$0xff] }
 0x33d   : > { %1198 = vst.msk [vmem:[#allocation2 + $0x8] sm:$0xff] %vm431_vm0, %v4394_v21  ;;  %v1192_v24 = vmax.f32 %v1188_v22, 0.0 }
 0x33e   : > { %v4401_v25 = vadd.f32 %v1193_v23, %v4337_v39  ;;  %v1569_v23 = vld [vmem:[#allocation9 + $0x118] sm:$0xff] }
 0x33f   : > { %v4404_v26 = vadd.f32 %v1192_v24, %v4341_v41  ;;  %v1672_v24 = vld [vmem:[#allocation9 + $0x120] sm:$0xff] }
 0x340   : > { %1201 = vst.msk [vmem:[#allocation2 + $0x50] sm:$0xff] %vm431_vm0, %v4401_v25 }
 0x341   : > { %1200 = vst.msk [vmem:[#allocation2 + $0x38] sm:$0xff] %vm431_vm0, %v4404_v26 }
 0x343   : > { %v4410_v34 = vld [vmem:[#allocation2 + $0x20] sm:$0xff] }
 0x344   : > { %v4412_v36 = vld [vmem:[#allocation2 + $0x8] sm:$0xff]  ;;  %v3571_v33 = vpack.i.bf16 %v4410_v34, %v3950_v28 }
 0x345   : > { %v3556_v27 = vpack.i.bf16 %v4410_v34, %v4412_v36  ;;  %v3561_v30 = vpack.i.bf16 %v4412_v36, %v3950_v28  ;;  %v3257_v17 = vpack.c.bf16 %v4410_v34, %v4412_v36  ;;  %v1673_v34 = vld [vmem:[#allocation9 + $0x128] sm:$0xff]  ;;  %v1674_v36 = vld [vmem:[#allocation9 + $0x130] sm:$0xff] }
 0x347   : > { %3557 = vrot.lane.b32.xlu0 %v3556_v27, %s3955_s7  ;;  %v4417_v39 = vld [vmem:[#allocation2 + $0x50] sm:$0xff]  ;;  %v1675_v27 = vld [vmem:[#allocation9 + $0x138] sm:$0xff] }
 0x348   : > { %v4419_v41 = vld [vmem:[#allocation2 + $0x38] sm:$0xff]  ;;  %v3581_v37 = vpack.i.bf16 %v4417_v39, %v3950_v28 }
 0x349   : > { %v3566_v31 = vpack.i.bf16 %v4417_v39, %v4419_v41  ;;  %v3576_v32 = vpack.i.bf16 %v4419_v41, %v3950_v28  ;;  %v3261_v22 = vpack.c.bf16 %v4417_v39, %v4419_v41 }
 0x34b   : > { %3562 = vrot.lane.b32.xlu0 %v3561_v30, %s3956_s10  ;;  %3567 = vrot.lane.b32.xlu1 %v3566_v31, %s3955_s7 }
 0x34f   : > { %3577 = vrot.lane.b32.xlu0 %v3576_v32, %s3956_s10  ;;  %3572 = vrot.lane.b32.xlu1 %v3571_v33, %s3956_s10 }
 0x353   : > { %1784 = vperm.xlu0 %3494, %v1778_v35   ;;  %3582 = vrot.lane.b32.xlu1 %v3581_v37, %s3956_s10 }
 0x357   : > { %1794 = vperm.xlu0 %3494, %v1780_v38   ;;  %1789 = vperm.xlu1 %3495, %v1779_v40  }
 0x35b   : > { %1799 = vperm.xlu1 %3495, %v1781_v42  }
 0x3b9   : > { %v3558_v43 = vpop.permute.xlu0 %3557 }
 0x3ba   : > { %v3560_v44 = vunpack.i.h.bf16 %v3558_v43  ;;  %v3559_v45 = vunpack.i.l.bf16 %v3558_v43 }
 0x3bc   : > { %v3225_v46 = vpack.c.bf16 %v3560_v44, %v3559_v45 }
 0x3bd   : > { %v3563_v47 = vpop.permute.xlu0 %3562  ;;  %v3568_v48 = vpop.permute.xlu1 %3567 }
 0x3be   : > { %v3570_v49 = vunpack.i.h.bf16 %v3568_v48  ;;  %v3569_v50 = vunpack.i.l.bf16 %v3568_v48  ;;  %3226 = vmatprep.subr.bf16.mxu0 %v3225_v46  ;;  %v3565_v51 = vunpack.i.h.bf16 %v3563_v47  ;;  %v3564_v52 = vunpack.i.l.bf16 %v3563_v47 }
 0x3bf   : > { %3228 = vmatpush3.bf16.msra.mxu0 %v3225_v46 }
 0x3c0   : > { %v3229_v53 = vpack.c.bf16 %v3570_v49, %v3569_v50  ;;  %v1354_v59 = vsel %vm1353_vm5, %v3564_v52, %v3565_v51  ;;  %v1832_v52 = vld [vmem:[#allocation9 + $0x160] sm:$0xff] }
 0x3c1   : > { %v3578_v54 = vpop.permute.xlu0 %3577  ;;  %v3573_v55 = vpop.permute.xlu1 %3572  ;;  %3096 = vmatprep.mubr.msk.f32.mxu1 %vm583_vm2, %v1832_v52 }
 0x3c2   : > { %v3575_v56 = vunpack.i.h.bf16 %v3573_v55  ;;  %v3574_v57 = vunpack.i.l.bf16 %v3573_v55  ;;  %3230 = vmatprep.subr.bf16.mxu0 %v3229_v53  ;;  %v3580_v60 = vunpack.i.h.bf16 %v3578_v54  ;;  %v3579_v61 = vunpack.i.l.bf16 %v3578_v54 }
 0x3c3   : > { %3232 = vmatpush3.bf16.msra.mxu0 %v3229_v53 }
 0x3c4   : > { %v1355_v62 = vsel %vm1353_vm5, %v3574_v57, %v3575_v56  ;;  %v1356_v5 = vsel %vm1353_vm5, %v3579_v61, %v3580_v60  ;;  %v2429_v60 = vld [vmem:[#allocation11 + $0x40] sm:$0xff]  ;;  %v2431_v61 = vld [vmem:[#allocation11 + $0x50] sm:$0xff] }
 0x3c5   : > { %v3233_v0 = vpack.c.bf16 %v1355_v62, %v1354_v59  ;;  %v3583_v1 = vpop.permute.xlu1 %3582  ;;  %v2430_v62 = vld [vmem:[#allocation11 + $0x48] sm:$0xff] }
 0x3c6   : > { %v3585_v2 = vunpack.i.h.bf16 %v3583_v1  ;;  %v3584_v3 = vunpack.i.l.bf16 %v3583_v1  ;;  %3027 = vmatmul.mubr.msk.f32.vlgmr.msra.gmra.mrb[8].mxu0 %vm583_vm2, %v1217_v58 }
 0x3c7   : > { %3234 = vmatprep.subr.bf16.mxu0 %v3233_v0  ;;  %3029 = vmatprep.mubr.msk.f32.mxu0 %vm583_vm2, %v1218_v63  ;;  %v2466_v63 = vld [vmem:[#allocation14] sm:$0xff] }
 0x3c8   : > { %v1357_v6 = vsel %vm1353_vm5, %v3584_v3, %v3585_v2  ;;  %3236 = vmatpush3.bf16.msra.mxu0 %v3233_v0 }
 0x3c9   : > { %v3237_v8 = vpack.c.bf16 %v1357_v6, %v1356_v5 }
 0x3ca   : > { %3030 = vmatmul.mubr.msk.f32.gmra.mrb[10].mxu0 %vm583_vm2, %v1219_v4 }
 0x3cb   : > { %3238 = vmatprep.subr.bf16.mxu0 %v3237_v8  ;;  %3040 = vmatprep.mubr.msk.f32.mxu0 %vm583_vm2, %v1203_v7 }
 0x3cc   : > { %3240 = vmatpush3.bf16.msra.mxu0 %v3237_v8 }
 0x3cd   : > { %3242 = vmatprep.subr.bf16.mxu0 %v3233_v0 }
 0x3cf   : > { %3041 = vmatmul.mubr.msk.f32.vlgmr.msra.gmra.mrb[8].mxu0 %vm583_vm2, %v1204_v9 }
 0x3d0   : > { %3244 = vmatpush3.bf16.msra.mxu0 %v3233_v0  ;;  %3043 = vmatprep.mubr.msk.f32.mxu0 %vm583_vm2, %v1205_v10  ;;  %v2432_v0 = vld [vmem:[#allocation11 + $0x58] sm:$0xff] }
 0x3d1   : > { %3246 = vmatprep.subr.bf16.mxu0 %v3237_v8 }
 0x3d2   : > { %v1785_v39 = vpop.permute.xlu0 %1784 }
 0x3d3   : > { %3044 = vmatmul.mubr.msk.f32.gmra.mrb[10].mxu0 %vm583_vm2, %v1206_v11 }
 0x3d4   : > { %3248 = vmatpush3.bf16.msra.mxu0 %v3237_v8  ;;  %3054 = vmatprep.mubr.msk.f32.mxu0 %vm583_vm2, %v1460_v12 }
 0x3d5   : > { %3250 = vmatprep.subr.bf16.mxu0 %v3225_v46 }
 0x3d6   : > { %v1790_v29 = vpop.permute.xlu1 %1789  ;;  %v1795_v40 = vpop.permute.xlu0 %1794 }
 0x3d7   : > { %3055 = vmatmul.mubr.msk.f32.vlgmr.msra.gmra.mrb[8].mxu0 %vm583_vm2, %v1461_v13 }
 0x3d8   : > { %3252 = vmatpush3.bf16.msra.mxu0 %v3225_v46  ;;  %3057 = vmatprep.mubr.msk.f32.mxu0 %vm583_vm2, %v1462_v14 }
 0x3d9   : > { %3254 = vmatprep.subr.bf16.mxu0 %v3229_v53 }
 0x3da   : > { %v1800_v35 = vpop.permute.xlu1 %1799 }
 0x3db   : > { %3058 = vmatmul.mubr.msk.f32.gmra.mrb[10].mxu0 %vm583_vm2, %v1463_v15 }
 0x3dc   : > { %3256 = vmatpush3.bf16.msra.mxu0 %v3229_v53  ;;  %3068 = vmatprep.mubr.msk.f32.mxu0 %vm583_vm2, %v1566_v16  ;;  %v1833_v16 = vld [vmem:[#allocation9 + $0x168] sm:$0xff] }
 0x3dd   : > { %3258 = vmatprep.subr.bf16.mxu0 %v3257_v17 }
 0x3df   : > { %3069 = vmatmul.mubr.msk.f32.vlgmr.msra.gmra.mrb[8].mxu0 %vm583_vm2, %v1567_v18 }
 0x3e0   : > { %3260 = vmatpush3.bf16.msra.mxu0 %v3257_v17  ;;  %3071 = vmatprep.mubr.msk.f32.mxu0 %vm583_vm2, %v1568_v20 }
 0x3e1   : > { %3262 = vmatprep.subr.bf16.mxu0 %v3261_v22 }
 0x3e3   : > { %3072 = vmatmul.mubr.msk.f32.gmra.mrb[10].mxu0 %vm583_vm2, %v1569_v23  ;;  %v1834_v23 = vld [vmem:[#allocation9 + $0x170] sm:$0xff] }
 0x3e4   : > { %3264 = vmatpush3.bf16.msra.mxu0 %v3261_v22  ;;  %3082 = vmatprep.mubr.msk.f32.mxu0 %vm583_vm2, %v1672_v24 }
 0x3e7   : > { %3083 = vmatmul.mubr.msk.f32.vlgmr.msra.gmra.mrb[8].mxu0 %vm583_vm2, %v1673_v34 }
 0x3e8   : > { %3085 = vmatprep.mubr.msk.f32.mxu0 %vm583_vm2, %v1674_v36 }
 0x3eb   : > { %3086 = vmatmul.mubr.msk.f32.gmra.mrb[10].mxu0 %vm583_vm2, %v1675_v27 }
 0x3ec   : > { %3166 = vmatprep.mubr.msk.f32.mxu0 %vm3958_vm6, %v3950_v28 }
 0x4ba   : > { %v3084_v41 = vpop.f32.mrb[8].mxu0 }
 0x4bb   : > { %v1803_v30 = vadd.f32 %v3084_v41, %v1790_v29  ;;  %v1754_v31 = vpop.f32.mrb[9].mxu0 }
 0x4bc   : > { %v1802_v32 = vadd.f32 %v1785_v39, %v1754_v31  ;;  %v1835_v39 = vld [vmem:[#allocation9 + $0x178] sm:$0xff] }
 0x4bd   : > { %v1807_v33 = vmax.f32 %v1803_v30, 0.0 }
 0x4be   : > { %v1806_v37 = vmax.f32 %v1802_v32, 0.0  ;;  %v3087_v38 = vpop.f32.mrb[10].mxu0 }
 0x4bf   : > { %v4459_v42 = vadd.f32 %v1807_v33, %v4391_v19  ;;  %v1805_v43 = vadd.f32 %v3087_v38, %v1800_v35  ;;  %v1764_v44 = vpop.f32.mrb[11].mxu0  ;;  %v1819_v33 = vld [vmem:[#allocation9 + $0x140] sm:$0xff] }
 0x4c0   : > { %v4462_v45 = vadd.f32 %v1806_v37, %v4394_v21  ;;  %v1804_v46 = vadd.f32 %v1795_v40, %v1764_v44 }
 0x4c1   : > { %1815 = vst.msk [vmem:[#allocation2 + $0x20] sm:$0xff] %vm431_vm0, %v4459_v42  ;;  %v1809_v47 = vmax.f32 %v1805_v43, 0.0 }
 0x4c2   : > { %1814 = vst.msk [vmem:[#allocation2 + $0x8] sm:$0xff] %vm431_vm0, %v4462_v45  ;;  %v1808_v48 = vmax.f32 %v1804_v46, 0.0 }
 0x4c3   : > { %v4469_v49 = vadd.f32 %v1809_v47, %v4401_v25  ;;  %v1820_v47 = vld [vmem:[#allocation9 + $0x148] sm:$0xff] }
 0x4c4   : > { %v4472_v19 = vadd.f32 %v1808_v48, %v4404_v26 }
 0x4c5   : > { %1817 = vst.msk [vmem:[#allocation2 + $0x50] sm:$0xff] %vm431_vm0, %v4469_v49 }
 0x4c6   : > { %1816 = vst.msk [vmem:[#allocation2 + $0x38] sm:$0xff] %vm431_vm0, %v4472_v19 }
 0x4c8   : > { %v1826_v21 = vld [vmem:[#allocation2 + $0x20] sm:$0xff] }
 0x4c9   : > { %v1824_v50 = vld [vmem:[#allocation2 + $0x8] sm:$0xff]  ;;  %v3601_v58 = vpack.i.bf16 %v1826_v21, %v3950_v28 }
 0x4ca   : > { %v3586_v51 = vpack.i.bf16 %v1826_v21, %v1824_v50  ;;  %v4478_v53 = vpack.c.bf16 %v1826_v21, %v1824_v50  ;;  %v3591_v26 = vpack.i.bf16 %v1824_v50, %v3950_v28 }
 0x4cc   : > { %3587 = vrot.lane.b32.xlu0 %v3586_v51, %s3953_s9  ;;  %v1830_v25 = vld [vmem:[#allocation2 + $0x50] sm:$0xff] }
 0x4cd   : > { %v1828_v54 = vld [vmem:[#allocation2 + $0x38] sm:$0xff]  ;;  %v3606_v59 = vpack.i.bf16 %v1830_v25, %v3950_v28 }
 0x4ce   : > { %v3596_v55 = vpack.i.bf16 %v1830_v25, %v1828_v54  ;;  %v4483_v56 = vpack.c.bf16 %v1830_v25, %v1828_v54  ;;  %v3611_v57 = vpack.i.bf16 %v1828_v54, %v3950_v28  ;;  %v1821_v25 = vld [vmem:[#allocation9 + $0x150] sm:$0xff] }
 0x4d0   : > { %3592 = vrot.lane.b32.xlu0 %v3591_v26, %s3952_s8  ;;  %3597 = vrot.lane.b32.xlu1 %v3596_v55, %s3953_s9 }
 0x4d4   : > { %3612 = vrot.lane.b32.xlu0 %v3611_v57, %s3952_s8  ;;  %3602 = vrot.lane.b32.xlu1 %v3601_v58, %s3952_s8 }
 0x4d8   : > { %3617 = vrot.lane.b32.xlu0 %v3591_v26, %s3951_s1  ;;  %3607 = vrot.lane.b32.xlu1 %v3606_v59, %s3952_s8  ;;  %s3959_s8 = smov [#allocation15]  }
 0x4d9   : > { %s3848_s9 = sshll.u32 %s3959_s8, 4  ;;  %s3849_s9 = int_to_ptr.vmem [resolvable:$false] %s3848_s9 }
 0x4da   : > { %p3851_p0 = scmp.lt.s32.totalorder %s4543_s19, %s3849_s9 }
 0x4dc   : > { %3627 = vrot.lane.b32.xlu0 %v3611_v57, %s3951_s1  ;;  %3622 = vrot.lane.b32.xlu1 %v3601_v58, %s3951_s1  ;;  %v1822_v58 = vld [vmem:[#allocation9 + $0x158] sm:$0xff] }
 0x4e0   : > { %3637 = vrot.lane.b32.xlu0 %v3586_v51, %s3954_s17  ;;  %3632 = vrot.lane.b32.xlu1 %v3606_v59, %s3951_s1  ;;  %s2547_s1 = scalar_lea.sflag [#allocation5], %s4280_s18 }
 0x4e4   : > { %2435 = vperm.xlu0 %3494, %v2429_v60   ;;  %3642 = vrot.lane.b32.xlu1 %v3596_v55, %s3954_s17  ;;  %s3850_s17 = scalar_lea.vmem %s3849_s9, 256 }
 0x4e5   : > { %p3852_p7 = scmp.lt.s32.totalorder %s3850_s17, %s3844_s27 }
 0x4e7   : > { %p3853_p5 = por %p3852_p7, %p3851_p0 }
 0x4e8   : > { %2445 = vperm.xlu0 %3494, %v2431_v61   ;;  %2440 = vperm.xlu1 %3495, %v2430_v62  }
 0x4e9   : > { %p3854_p8 = pnand %p3853_p5, %p3847_p12 }
 0x4ec   : > { %2469 = vperm.xlu0 %3494, %v2466_v63   ;;  %2450 = vperm.xlu1 %3495, %v2432_v0   ;;  %v2075_v63 = vld [vmem:[#allocation9 + $0x180] sm:$0xff] }
 0x53e   : > { %v3588_v1 = vpop.permute.xlu0 %3587 }
 0x53f   : > { %v3590_v2 = vunpack.i.h.bf16 %v3588_v1  ;;  %v3589_v3 = vunpack.i.l.bf16 %v3588_v1 }
 0x541   : > { %v3265_v4 = vpack.c.bf16 %v3590_v2, %v3589_v3  ;;  %v2076_v3 = vld [vmem:[#allocation9 + $0x188] sm:$0xff] }
 0x542   : > { %v3593_v5 = vpop.permute.xlu0 %3592  ;;  %v3598_v6 = vpop.permute.xlu1 %3597 }
 0x543   : > { %v3600_v7 = vunpack.i.h.bf16 %v3598_v6  ;;  %v3599_v8 = vunpack.i.l.bf16 %v3598_v6  ;;  %3266 = vmatprep.subr.bf16.mxu1 %v3265_v4  ;;  %v3595_v9 = vunpack.i.h.bf16 %v3593_v5  ;;  %v3594_v10 = vunpack.i.l.bf16 %v3593_v5  ;;  %v2078_v6 = vld [vmem:[#allocation9 + $0x198] sm:$0xff] }
 0x544   : > { %3268 = vmatpush3.bf16.msra.mxu1 %v3265_v4  ;;  %v2077_v4 = vld [vmem:[#allocation9 + $0x190] sm:$0xff] }
 0x545   : > { %v3269_v11 = vpack.c.bf16 %v3600_v7, %v3599_v8  ;;  %v1969_v20 = vsel %vm828_vm4, %v3594_v10, %v3595_v9  ;;  %v2205_v7 = vld [vmem:[#allocation9 + $0x1a0] sm:$0xff]  ;;  %v2206_v8 = vld [vmem:[#allocation9 + $0x1a8] sm:$0xff]  ;;  %v2207_v9 = vld [vmem:[#allocation9 + $0x1b0] sm:$0xff] }
 0x546   : > { %v3613_v12 = vpop.permute.xlu0 %3612  ;;  %v3603_v13 = vpop.permute.xlu1 %3602  ;;  %v2208_v10 = vld [vmem:[#allocation9 + $0x1b8] sm:$0xff] }
 0x547   : > { %v3605_v14 = vunpack.i.h.bf16 %v3603_v13  ;;  %v3604_v15 = vunpack.i.l.bf16 %v3603_v13  ;;  %3270 = vmatprep.subr.bf16.mxu1 %v3269_v11  ;;  %v3615_v17 = vunpack.i.h.bf16 %v3613_v12  ;;  %v3614_v18 = vunpack.i.l.bf16 %v3613_v12  ;;  %v2324_v12 = vld [vmem:[#allocation9 + $0x1c8] sm:$0xff]  ;;  %v2325_v13 = vld [vmem:[#allocation9 + $0x1d0] sm:$0xff] }
 0x548   : > { %3272 = vmatpush3.bf16.msra.mxu1 %v3269_v11  ;;  %v2323_v11 = vld [vmem:[#allocation9 + $0x1c0] sm:$0xff] }
 0x549   : > { %v1970_v22 = vsel %vm828_vm4, %v3604_v15, %v3605_v14  ;;  %v1971_v31 = vsel %vm828_vm4, %v3614_v18, %v3615_v17  ;;  %v2326_v14 = vld [vmem:[#allocation9 + $0x1d8] sm:$0xff] }
 0x54a   : > { %v3618_v24 = vpop.permute.xlu0 %3617  ;;  %v3608_v34 = vpop.permute.xlu1 %3607  ;;  %v3273_v36 = vpack.c.bf16 %v1970_v22, %v1969_v20 }
 0x54b   : > { %v3610_v27 = vunpack.i.h.bf16 %v3608_v34  ;;  %v3609_v29 = vunpack.i.l.bf16 %v3608_v34  ;;  %3097 = vmatmul.mubr.msk.f32.vlgmr.msra.gmra.mrb[4].mxu1 %vm583_vm2, %v1833_v16  ;;  %v3620_v41 = vunpack.i.h.bf16 %v3618_v24  ;;  %v3619_v30 = vunpack.i.l.bf16 %v3618_v24 }
 0x54c   : > { %3274 = vmatprep.subr.bf16.mxu1 %v3273_v36  ;;  %3099 = vmatprep.mubr.msk.f32.mxu1 %vm583_vm2, %v1834_v23 }
 0x54d   : > { %3276 = vmatpush3.bf16.msra.mxu1 %v3273_v36  ;;  %v1972_v32 = vsel %vm828_vm4, %v3609_v29, %v3610_v27  ;;  %v2095_v48 = vsel %vm701_vm3, %v3619_v30, %v3620_v41 }
 0x54e   : > { %v3628_v35 = vpop.permute.xlu0 %3627  ;;  %v3623_v37 = vpop.permute.xlu1 %3622  ;;  %v3277_v38 = vpack.c.bf16 %v1972_v32, %v1971_v31 }
 0x54f   : > { %v3625_v40 = vunpack.i.h.bf16 %v3623_v37  ;;  %v3624_v43 = vunpack.i.l.bf16 %v3623_v37  ;;  %3100 = vmatmul.mubr.msk.f32.gmra.mrb[6].mxu1 %vm583_vm2, %v1835_v39  ;;  %v3630_v44 = vunpack.i.h.bf16 %v3628_v35  ;;  %v3629_v46 = vunpack.i.l.bf16 %v3628_v35 }
 0x550   : > { %3278 = vmatprep.subr.bf16.mxu1 %v3277_v38  ;;  %3110 = vmatprep.mubr.msk.f32.mxu1 %vm583_vm2, %v1819_v33 }
 0x551   : > { %3280 = vmatpush3.bf16.msra.mxu1 %v3277_v38  ;;  %v2096_v21 = vsel %vm701_vm3, %v3624_v43, %v3625_v40  ;;  %v2097_v59 = vsel %vm701_vm3, %v3629_v46, %v3630_v44 }
 0x552   : > { %v3638_v50 = vpop.permute.xlu0 %3637  ;;  %v3633_v51 = vpop.permute.xlu1 %3632  ;;  %v3281_v52 = vpack.c.bf16 %v2096_v21, %v2095_v48 }
 0x553   : > { %v3635_v54 = vunpack.i.h.bf16 %v3633_v51  ;;  %v3634_v26 = vunpack.i.l.bf16 %v3633_v51  ;;  %v3640_v55 = vunpack.i.h.bf16 %v3638_v50  ;;  %v3639_v57 = vunpack.i.l.bf16 %v3638_v50 }
 0x554   : > { %3111 = vmatmul.mubr.msk.f32.vlgmr.msra.gmra.mrb[4].mxu1 %vm583_vm2, %v1820_v47  ;;  %3282 = vmatprep.subr.bf16.mxu1 %v3281_v52 }
 0x555   : > { %3284 = vmatpush3.bf16.msra.mxu1 %v3281_v52  ;;  %3113 = vmatprep.mubr.msk.f32.mxu1 %vm583_vm2, %v1821_v25  ;;  %v2098_v60 = vsel %vm701_vm3, %v3634_v26, %v3635_v54  ;;  %v3289_v0 = vpack.c.bf16 %v3640_v55, %v3639_v57 }
 0x556   : > { %v3643_v61 = vpop.permute.xlu1 %3642  ;;  %v3285_v62 = vpack.c.bf16 %v2098_v60, %v2097_v59 }
 0x557   : > { %v3645_v1 = vunpack.i.h.bf16 %v3643_v61  ;;  %v3644_v2 = vunpack.i.l.bf16 %v3643_v61 }
 0x558   : > { %3114 = vmatmul.mubr.msk.f32.gmra.mrb[6].mxu1 %vm583_vm2, %v1822_v58  ;;  %3286 = vmatprep.subr.bf16.mxu1 %v3285_v62 }
 0x559   : > { %3288 = vmatpush3.bf16.msra.mxu1 %v3285_v62  ;;  %3124 = vmatprep.mubr.msk.f32.mxu1 %vm583_vm2, %v2075_v63  ;;  %v3293_v5 = vpack.c.bf16 %v3645_v1, %v3644_v2 }
 0x55a   : > { %3290 = vmatprep.subr.bf16.mxu1 %v3289_v0 }
 0x55c   : > { %3125 = vmatmul.mubr.msk.f32.vlgmr.msra.gmra.mrb[4].mxu1 %vm583_vm2, %v2076_v3 }
 0x55d   : > { %3292 = vmatpush3.bf16.msra.mxu1 %v3289_v0  ;;  %3127 = vmatprep.mubr.msk.f32.mxu1 %vm583_vm2, %v2077_v4 }
 0x55e   : > { %3294 = vmatprep.subr.bf16.mxu1 %v3293_v5 }
 0x560   : > { %3128 = vmatmul.mubr.msk.f32.gmra.mrb[6].mxu1 %vm583_vm2, %v2078_v6 }
 0x561   : > { %3296 = vmatpush3.bf16.msra.mxu1 %v3293_v5  ;;  %3138 = vmatprep.mubr.msk.f32.mxu1 %vm583_vm2, %v2205_v7 }
 0x562   : > { %3298 = vmatprep.subr.bf16.mxu1 %v4478_v53 }
 0x563   : > { %v2436_v16 = vpop.permute.xlu0 %2435 }
 0x564   : > { %3139 = vmatmul.mubr.msk.f32.vlgmr.msra.gmra.mrb[4].mxu1 %vm583_vm2, %v2206_v8 }
 0x565   : > { %3300 = vmatpush3.bf16.msra.mxu1 %v4478_v53  ;;  %3141 = vmatprep.mubr.msk.f32.mxu1 %vm583_vm2, %v2207_v9  ;;  %v3957_v53 = vmov 0.0|0.0  }
 0x566   : > { %3302 = vmatprep.subr.bf16.mxu1 %v4483_v56  ;;  %3305 = vmatprep.subr.bf16.mxu0 %v3957_v53 }
 0x567   : > { %v2441_v15 = vpop.permute.xlu1 %2440  ;;  %v2446_v36 = vpop.permute.xlu0 %2445 }
 0x568   : > { %3142 = vmatmul.mubr.msk.f32.gmra.mrb[6].mxu1 %vm583_vm2, %v2208_v10 }
 0x569   : > { %3304 = vmatpush3.bf16.msra.mxu1 %v4483_v56  ;;  %3152 = vmatprep.mubr.msk.f32.mxu1 %vm583_vm2, %v2323_v11 }
 0x56b   : > { %v2451_v23 = vpop.permute.xlu1 %2450 }
 0x56c   : > { %3153 = vmatmul.mubr.msk.f32.vlgmr.msra.gmra.mrb[4].mxu1 %vm583_vm2, %v2324_v12 }
 0x56d   : > { %3155 = vmatprep.mubr.msk.f32.mxu1 %vm583_vm2, %v2325_v13 }
 0x570   : > { %3156 = vmatmul.mubr.msk.f32.gmra.mrb[6].mxu1 %vm583_vm2, %v2326_v14 }
 0x63f   : > { %v3154_v17 = vpop.f32.mrb[4].mxu1 }
 0x640   : > { %v2454_v56 = vadd.f32 %v3154_v17, %v2441_v15  ;;  %v2405_v18 = vpop.f32.mrb[5].mxu1 }
 0x641   : > { %v2453_v20 = vadd.f32 %v2436_v16, %v2405_v18 }
 0x642   : > { %v2458_v22 = vmax.f32 %v2454_v56, 0.0 }
 0x643   : > { %v2457_v24 = vmax.f32 %v2453_v20, 0.0  ;;  %v3157_v34 = vpop.f32.mrb[6].mxu1 }
 0x644   : > { %v2462_v27 = vadd.f32 %v2458_v22, %v4459_v42  ;;  %v2456_v29 = vadd.f32 %v3157_v34, %v2451_v23  ;;  %v2415_v39 = vpop.f32.mrb[7].mxu1  ;;  %v2465_v42 = vld [vmem:[#allocation12] sm:$0xff] }
 0x645   : > { %v2461_v41 = vadd.f32 %v2457_v24, %v4462_v45  ;;  %v2455_v28 = vadd.f32 %v2446_v36, %v2415_v39  ;;  %v2470_v45 = vpop.permute.xlu0 %2469 }
 0x646   : > { %v2460_v30 = vmax.f32 %v2456_v29, 0.0 }
 0x647   : > { %v3306_v31 = vpack.c.bf16 %v2462_v27, %v2461_v41  ;;  %v2459_v32 = vmax.f32 %v2455_v28, 0.0 }
 0x648   : > { %v2464_v33 = vadd.f32 %v2460_v30, %v4469_v49 }
 0x649   : > { %v2463_v35 = vadd.f32 %v2459_v32, %v4472_v19  ;;  %3307 = vmatpush3.bf16.msra.mxu0 %v3306_v31 }
 0x64a   : > { %3308 = vmatprep.subr.bf16.mxu0 %v3957_v53 }
 0x64b   : > { %v3309_v37 = vpack.c.bf16 %v2464_v33, %v2463_v35 }
 0x64d   : > { %3310 = vmatpush3.bf16.msra.mxu0 %v3309_v37 }
 0x650   : > { %3167 = vmatmul.mubr.msk.f32.vlgmr.msra.gmra.mrb[12].mxu0 %vm583_vm2, %v2465_v42 }
 0x723   : > { %v2541_v38 = vpop.f32.mrb[12].mxu0 }
 0x724   : > { %v2542_v40 = vadd.f32 %v2541_v38, %v2470_v45  ;;  %v3168_v43 = vpop.f32.mrb[13].mxu0 }
 0x726   : > { %2545 = vst.msk [vmem:[%s394_s21] sm:$0xff] %vm431_vm0, %v2542_v40 }
 0x727   : > { %3857 = shalt.err (!%p3854_p8)
}
 0x728   : > { %s3858_s18 = scalar_lea.hbm %s4541_s20, 128  ;;  %s3862_s23 = scalar_lea.hbm %s4626_s16, 256 }
 0x729   : > { %p3859_p3 = scmp.ne.s32.totalorder %s4541_s20, %s3858_s18  ;;  %p3863_p13 = scmp.lt.u32.totalorder %s4541_s20, %s4626_s16 }
 0x72a   : > { %p3864_p1 = scmp.lt.u32.totalorder %s3862_s23, %s3858_s18  ;;  %p3866_p2 = scmp.lt.u32.totalorder %s3858_s18, %s4541_s20 }
 0x72b   : > { %p3860_p11 = pnand %p3859_p3, %p4627_p9 }
 0x72c   : > { %p3865_p4 = por %p3864_p1, %p3863_p13 }
 0x72d   : > { %p3861_p6 = pneg %p3860_p11 }
 0x72e   : > { %p3867_p10 = por %p3866_p2, %p3865_p4 }
 0x730   : > { %p3868_p12 = pnand %p3867_p10, %p3861_p6 }
 0x732   : > { %3871 = shalt.err (!%p3868_p12)
}
 0x733   : > { %3385 = dma.vmem_to_hbm [thread:$0]  (%p4627_p9), %s4543_s19, 128, %s4541_s20, %s2547_s1  }
 0x734 PF: > { %s2572_s15 = sand.u32 1, %s3918_s24   ;;  %p4628_p0 = scmp.ne.s32.totalorder %s4621_s14, 0 }
 0x735   : > { %p4629_p7 = scmp.ge.s32.totalorder %s3938_s29, 2  ;;  %s2573_s22 = scalar_lea.sflag [#allocation5], %s2572_s15 }
 0x737   : > { %p3411_p5 = pnand %p4629_p7, %p4628_p0 }
 0x739   : > { %3913 = dma.done.wait (!%p3411_p5), %s2573_s22, 128  }
 0x73a   : > { %3915 = vsyncadd (!%p3411_p5), %s2573_s22, 4294967168  ;;  %s26_s29 = sadd.s32 1, %s3938_s29   ;;  %s4630_s24 = smov %s3922_s25 }
 0x73b   : > { %p23_p8 = scmp.ge.s32.totalorder %s26_s29, 4   ;;  %s4631_s25 = smov %s3926_s26 }
 0x73c   : > { %s4632_s26 = smov %s4224_s11  ;;  %s4633_s27 = smov %s3934_s28 }
 0x73d   : > { %s4634_s28 = smov %s4636_s30  ;;  %25 = sbr.rel (!%p23_p8) target bundleno = 12 (0xc), region = 137 }
 0x744   :  { %2578 = vsyncpa [#allocation4], 1 }
 0x745   :  { %2580 = vsyncpa [#allocation4 + $0x1], 1 }
 0x746   :  { %2581 = vsyncpa [#allocation7], 1 }
 0x747   :  { %2582 = vsyncpa [#allocation10], 1 }
 0x748   :  { %2583 = vsyncpa [#allocation13], 1 }
 0x749   :  { %2584 = vsyncpa [#allocation5], 1 }
 0x74a   :  { %2586 = vsyncpa [#allocation5 + $0x1], 1 }

</bundles_post_ra>
